<compile_context>
chip_gen: v7x
topology: tpu7x:2x2x1
jax: 0.10.0
libtpu: 0.0.40
codegen_flags: <defaults>
</compile_context>

<pallas_src>
import jax
import jax.numpy as jnp
from jax.experimental import pallas as pl
from jax.experimental.pallas import tpu as pltpu

_COS_EPS = 1e-8   # torch.cosine_similarity default eps
_LN_EPS = 1e-6    # LayerNorm eps in the module


def _output_layer_kernel(ab_ref, x1_ref, x2_ref, wf1_ref, wf2_ref,
                         hp_ref, small_ref, scal_ref, out_ref):
    f32 = jnp.float32
    bf16 = jnp.bfloat16
    # Contract the LAST dim of both operands (L @ R.T): with a small-M lhs the result
    # lands [M, TILE_B] (batch on the lane axis) -> fully lane-major scalar tail.
    dn_t = (((1,), (1,)), ((), ()))
    # Standard matmul dimension numbers.
    dn = (((1,), (0,)), ((), ()))

    # ------------- cosine_similarity(inputI[0], inputII[0], dim=1) -------------------
    # ab = [a | b] packed along lanes. Two bf16 MXU passes:
    #   norms: block-selector [2, 2*D0] . (ab * ab)         -> [saa ; sbb]  ([2, TB])
    #   cross: 0.5-row       [1, 2*D0] . (ab * roll(ab,D0)) -> sab          ([1, TB])
    ab32 = ab_ref[...].astype(f32)
    two_d0 = ab32.shape[-1]
    d0 = two_d0 // 2
    sq = (ab32 * ab32).astype(bf16)                                     # [a*a | b*b]
    cross = (ab32 * pltpu.roll(ab32, shift=d0, axis=1)).astype(bf16)    # [a*b | b*a]
    lane = jax.lax.broadcasted_iota(jnp.int32, (2, two_d0), 1)
    row = jax.lax.broadcasted_iota(jnp.int32, (2, two_d0), 0)
    sel = jnp.where((lane < d0) == (row == 0), 1.0, 0.0).astype(bf16)   # [2, 2*D0]
    half = jnp.full((1, two_d0), 0.5, bf16)                             # [1, 2*D0]
    norms = jax.lax.dot_general(sel, sq, dn_t, preferred_element_type=f32)    # [2, TB]
    sab = jax.lax.dot_general(half, cross, dn_t, preferred_element_type=f32)  # [1, TB]
    saa = norms[0:1, :]
    sbb = norms[1:2, :]
    # torch guard: sab / max(||a||*||b||, eps) == sab * rsqrt(max(saa*sbb, eps^2));
    # the eps^2 floor also keeps padded all-zero rows finite (no inf/NaN).
    sbert = sab * jax.lax.rsqrt(jnp.maximum(saa * sbb, _COS_EPS * _COS_EPS))  # [1, TB]

    # ------------- f_linear(cat(x1, x2)) as a split bf16 matmul (no concat) ----------
    t = jax.lax.dot_general(x1_ref[...], wf1_ref[...], dn, preferred_element_type=f32)
    t = t + jax.lax.dot_general(x2_ref[...], wf2_ref[...], dn, preferred_element_type=f32)
    t = t + hp_ref[0:1, :]                                              # + b_f, [TB, H]

    # ------------- LayerNorm: unbiased std, divides by (std + eps) -------------------
    h_dim = t.shape[-1]
    mean = jnp.sum(t, axis=-1, keepdims=True) * (1.0 / h_dim)
    d = t - mean
    var_unb = jnp.sum(d * d, axis=-1, keepdims=True) * (1.0 / (h_dim - 1))
    inv = pl.reciprocal(jnp.sqrt(var_unb) + _LN_EPS, approx=True)       # [TB, 1] on EUP
    y = d * inv * hp_ref[1:2, :] + hp_ref[2:3, :]                       # gamma, beta

    # ------------- relu -> dropout(identity) -> o_linear -> tanh ---------------------
    # TODO(synk): training-mode dropout is not implemented (eval forward => identity).
    r = jnp.maximum(y, 0.0).astype(bf16)                                # [TB, H] bf16
    wo = hp_ref[3:4, :].astype(bf16)                                    # [1, H]
    bo = scal_ref[0:1, 0:1]                                             # o_linear bias
    z = jax.lax.dot_general(wo, r, dn_t, preferred_element_type=f32) + bo     # [1, TB]
    tbert = jnp.tanh(z)                                                 # [1, TB]

    # ------- f_conection(cat(tbert, sbert)) -> relu -> o_conection (num_classes=1) ---
    wfc_t = small_ref[:, 0:1]          # [C4, 1] weight column applied to tbert
    wfc_s = small_ref[:, 1:2]          # [C4, 1] weight column applied to sbert
    bfc = small_ref[:, 2:3]            # [C4, 1] f_conection bias
    woc = small_ref[:, 3:4]            # [C4, 1] o_conection weight
    hid = jnp.maximum(wfc_t * tbert + wfc_s * sbert + bfc, 0.0)         # [C4, TB]
    boc = scal_ref[0:1, 1:2]                                            # o_conection bias
    # Small (C4-row) sublane reduce; XLU has slack now that the MXU runs bf16.
    c = jnp.sum(woc * hid, axis=0, keepdims=True) + boc                 # [1, TB]

    score = (jax.nn.sigmoid(c) + sbert) * 0.5                           # [1, TB]

    # Lane-dense output slab: row 0 = final score, row 1 = tbert.
    out_ref[0:1, :] = score.astype(out_ref.dtype)
    out_ref[1:2, :] = tbert.astype(out_ref.dtype)


def _round_up(x, m):
    return (x + m - 1) // m * m


def output_layer_forward(params, inputI, inputII, *, tile_b=1024, use_core_parallel=False):
    """Fused Pallas forward of Output_Layer (eval mode).

    inputI / inputII: tuples (x0, x1) with x0: [B, D0], x1: [B, D1].
    Returns (score [B, 1], tbert_out [B, 1]).
    """
    a, x1 = inputI
    b, x2 = inputII
    B, d0 = a.shape
    _, d1 = x1.shape

    wf = params["f_linear_w"]                      # torch layout [H, input_size]
    H = wf.shape[0]
    assert wf.shape[1] == 2 * d1, "input_size must equal 2 * inputI[1].shape[-1]"
    C4 = H // 4
    # num_classes must be 1 for the module's own shapes to be consistent
    # (f_conection.in_features == num_classes * 2 must match cat(tbert, sbert) width).
    assert params["o_linear_w"].shape == (1, H)
    assert params["f_conection_w"].shape == (C4, 2)
    assert params["o_conection_w"].shape == (1, C4)

    f32 = jnp.float32
    bf16 = jnp.bfloat16

    # ---- host-side (one-time) weight re-layout / packing -----------------------------
    wf_t = wf.T.astype(f32)                        # [2*D1, H] = [in, out]
    wf1 = wf_t[:d1].astype(bf16)                   # multiplies inputI[1]
    wf2 = wf_t[d1:].astype(bf16)                   # multiplies inputII[1]
    hp = jnp.stack(
        [params["f_linear_b"].astype(f32),         # row 0: b_f
         params["ln_a"].astype(f32),               # row 1: gamma
         params["ln_b"].astype(f32),               # row 2: beta
         params["o_linear_w"].reshape(-1).astype(f32)], axis=0)         # row 3: W_o
    small = jnp.stack(
        [params["f_conection_w"][:, 0],
         params["f_conection_w"][:, 1],
         params["f_conection_b"],
         params["o_conection_w"][0]], axis=1).astype(f32)               # [C4, 4]
    scal = jnp.array([[params["o_linear_b"][0],
                       params["o_conection_b"][0]]], f32)               # [1, 2]

    # ---- bf16 batch inputs: halves HBM traffic; a/b packed to fill the lane axis -----
    ab = jnp.concatenate([a, b], axis=-1).astype(bf16)                  # [B, 2*D0]
    x1b = x1.astype(bf16)
    x2b = x2.astype(bf16)

    # ---- batch tiling (lane-dense output => tile must be a multiple of 128) ----------
    tb = min(tile_b, _round_up(B, 128))
    tb = _round_up(tb, 128)
    Bp = _round_up(B, tb)
    if Bp != B:
        pad = ((0, Bp - B), (0, 0))
        ab, x1b, x2b = [jnp.pad(v, pad) for v in (ab, x1b, x2b)]

    grid = (Bp // tb,)
    batch_map = lambda i: (i, 0)
    const_map = lambda i: (0, 0)

    dims = (pltpu.CORE_PARALLEL,) if use_core_parallel else ("parallel",)

    out = pl.pallas_call(
        _output_layer_kernel,
        out_shape=jax.ShapeDtypeStruct((2, Bp), f32),
        grid_spec=pltpu.PrefetchScalarGridSpec(
            num_scalar_prefetch=0,
            grid=grid,
            in_specs=[
                pl.BlockSpec((tb, 2 * d0), batch_map),  # [inputI[0] | inputII[0]] bf16
                pl.BlockSpec((tb, d1), batch_map),      # inputI[1]  bf16
                pl.BlockSpec((tb, d1), batch_map),      # inputII[1] bf16
                pl.BlockSpec((d1, H), const_map),       # W_f top half    (VMEM-resident)
                pl.BlockSpec((d1, H), const_map),       # W_f bottom half (VMEM-resident)
                pl.BlockSpec((4, H), const_map),        # [b_f; gamma; beta; W_o]
                pl.BlockSpec((C4, 4), const_map),       # packed f/o_conection params
                pl.BlockSpec((1, 2), const_map),        # [b_o, b_oc]
            ],
            out_specs=pl.BlockSpec((2, tb), lambda i: (0, i)),
        ),
        compiler_params=pltpu.CompilerParams(
            dimension_semantics=dims,                   # "parallel"; CORE_PARALLEL opt-in (v7x)
            vmem_limit_bytes=32 * 1024 * 1024,          # <= physical on v5e/v6e/v7x
        ),
    )(ab, x1b, x2b, wf1, wf2, hp, small, scal)

    score = out[0, :B][:, None]     # [B, 1]
    tbert = out[1, :B][:, None]     # [B, 1]  (num_classes == 1)
    return score, tbert


def output_layer_reference(params, inputI, inputII):
    """Pure-JAX f32 reference mirroring the torch forward exactly (eval mode)."""
    a, x1 = inputI
    b, x2 = inputII
    a = a.astype(jnp.float32)
    b = b.astype(jnp.float32)
    sab = jnp.sum(a * b, axis=-1)
    na = jnp.sqrt(jnp.sum(a * a, axis=-1))
    nb = jnp.sqrt(jnp.sum(b * b, axis=-1))
    sbert = (sab / jnp.maximum(na * nb, _COS_EPS))[:, None]

    x = jnp.concatenate([x1, x2], axis=-1).astype(jnp.float32)
    t = x @ params["f_linear_w"].T + params["f_linear_b"]
    mean = jnp.mean(t, axis=-1, keepdims=True)
    std = jnp.sqrt(jnp.sum((t - mean) ** 2, axis=-1, keepdims=True) / (t.shape[-1] - 1))
    y = params["ln_a"] * (t - mean) / (std + _LN_EPS) + params["ln_b"]
    r = jnp.maximum(y, 0.0)
    tbert = jnp.tanh(r @ params["o_linear_w"].T + params["o_linear_b"])
    cc = jnp.concatenate([tbert, sbert], axis=-1)
    hid = jnp.maximum(cc @ params["f_conection_w"].T + params["f_conection_b"], 0.0)
    c = hid @ params["o_conection_w"].T + params["o_conection_b"]
    return (jax.nn.sigmoid(c) + sbert) / 2.0, tbert


if __name__ == "__main__":
    key = jax.random.PRNGKey(0)
    # num_classes = 1, hidden_size = 256 (module default), input_size = 2 * D1.
    # B deliberately not a multiple of 128 (exercises the zero-padded-row guards),
    # tile_b=128 gives a 3-step grid (exercises VMEM-resident weights across steps).
    B, D0, D1, H = 300, 64, 128, 256
    C4 = H // 4
    ks = jax.random.split(key, 14)

    a = jax.random.normal(ks[0], (B, D0), jnp.float32)     # inputI[0]
    b = jax.random.normal(ks[1], (B, D0), jnp.float32)     # inputII[0]
    x1 = jax.random.normal(ks[2], (B, D1), jnp.float32)    # inputI[1]
    x2 = jax.random.normal(ks[3], (B, D1), jnp.float32)    # inputII[1]

    s = 0.05
    params = {
        "f_linear_w": s * jax.random.normal(ks[4], (H, 2 * D1), jnp.float32),
        "f_linear_b": s * jax.random.normal(ks[5], (H,), jnp.float32),
        "ln_a": 1.0 + 0.1 * jax.random.normal(ks[6], (H,), jnp.float32),
        "ln_b": 0.1 * jax.random.normal(ks[7], (H,), jnp.float32),
        "o_linear_w": s * jax.random.normal(ks[8], (1, H), jnp.float32),
        "o_linear_b": s * jax.random.normal(ks[9], (1,), jnp.float32),
        "f_conection_w": s * jax.random.normal(ks[10], (C4, 2), jnp.float32),
        "f_conection_b": s * jax.random.normal(ks[11], (C4,), jnp.float32),
        "o_conection_w": s * jax.random.normal(ks[12], (1, C4), jnp.float32),
        "o_conection_b": s * jax.random.normal(ks[13], (1,), jnp.float32),
    }

    score, tbert = output_layer_forward(params, (a, x1), (b, x2), tile_b=128)
    jax.block_until_ready((score, tbert))

    ref_score, ref_tbert = output_layer_reference(params, (a, x1), (b, x2))
    err_s = float(jnp.max(jnp.abs(score - ref_score)))
    err_t = float(jnp.max(jnp.abs(tbert - ref_tbert)))
    # bf16 matmul operands against an f32 reference: 3e-2 comfortably absorbs it.
    assert err_s < 3e-2 and err_t < 3e-2, (err_s, err_t)
    print("KERNEL_OK")
</pallas_src>

<mosaic_0001>
module attributes {stable_mosaic.version = 11 : i64} {
  func.func @_output_layer_kernel(%arg0: i32, %arg1: memref<128x128xbf16, #tpu.memory_space<vmem>>, %arg2: memref<128x128xbf16, #tpu.memory_space<vmem>>, %arg3: memref<128x128xbf16, #tpu.memory_space<vmem>>, %arg4: memref<128x256xbf16, #tpu.memory_space<vmem>>, %arg5: memref<128x256xbf16, #tpu.memory_space<vmem>>, %arg6: memref<4x256xf32, #tpu.memory_space<vmem>>, %arg7: memref<64x4xf32, #tpu.memory_space<vmem>>, %arg8: memref<1x2xf32, #tpu.memory_space<vmem>>, %arg9: memref<2x128xf32, #tpu.memory_space<vmem>>) attributes {dimension_semantics = [#tpu.dimension_semantics<parallel>], iteration_bounds = array<i64: 3>, scalar_prefetch = 0 : i64, scratch_operands = 0 : i64, tpu.core_type = #tpu.core_type<tc>, window_params = [{transform_indices = @transform_0, window_bounds = array<i64: 128, 128>}, {transform_indices = @transform_1, window_bounds = array<i64: 128, 128>}, {transform_indices = @transform_2, window_bounds = array<i64: 128, 128>}, {pipeline_mode = #tpu.pipeline_mode<synchronous>, transform_indices = @transform_3, window_bounds = array<i64: 128, 256>}, {pipeline_mode = #tpu.pipeline_mode<synchronous>, transform_indices = @transform_4, window_bounds = array<i64: 128, 256>}, {pipeline_mode = #tpu.pipeline_mode<synchronous>, transform_indices = @transform_5, window_bounds = array<i64: 4, 256>}, {pipeline_mode = #tpu.pipeline_mode<synchronous>, transform_indices = @transform_6, window_bounds = array<i64: 64, 4>}, {pipeline_mode = #tpu.pipeline_mode<synchronous>, transform_indices = @transform_7, window_bounds = array<i64: 1, 2>}, {transform_indices = @transform_8, window_bounds = array<i64: 2, 128>}]} {
    %c0 = arith.constant 0 : index
    %c0_0 = arith.constant 0 : index
    %0 = vector.load %arg1[%c0, %c0_0] : memref<128x128xbf16, #tpu.memory_space<vmem>>, vector<128x128xbf16>
    %1 = arith.extf %0 : vector<128x128xbf16> to vector<128x128xf32>
    %2 = arith.mulf %1, %1 : vector<128x128xf32>
    %3 = arith.truncf %2 : vector<128x128xf32> to vector<128x128xbf16>
    %c64_i32 = arith.constant 64 : i32
    %4 = tpu.dynamic_rotate %1 by %c64_i32 dim 1 : vector<128x128xf32>, i32 -> vector<128x128xf32>
    %5 = arith.mulf %1, %4 : vector<128x128xf32>
    %6 = arith.truncf %5 : vector<128x128xf32> to vector<128x128xbf16>
    %7 = tpu.iota {dimensions = array<i32: 1>} : vector<2x128xi32>
    %8 = tpu.iota {dimensions = array<i32: 0>} : vector<2x128xi32>
    %c64_i32_1 = arith.constant 64 : i32
    %9 = vector.broadcast %c64_i32_1 : i32 to vector<2x128xi32>
    %10 = arith.cmpi slt, %7, %9 : vector<2x128xi32>
    %c0_i32 = arith.constant 0 : i32
    %11 = vector.broadcast %c0_i32 : i32 to vector<2x128xi32>
    %12 = arith.cmpi eq, %8, %11 : vector<2x128xi32>
    %13 = arith.xori %10, %12 : vector<2x128xi1>
    %cst = arith.constant dense<true> : vector<2x128xi1>
    %14 = arith.xori %13, %cst : vector<2x128xi1>
    %cst_2 = arith.constant 1.000000e+00 : f32
    %cst_3 = arith.constant 0.000000e+00 : f32
    %15 = vector.broadcast %cst_2 : f32 to vector<2x128xf32>
    %16 = vector.broadcast %cst_3 : f32 to vector<2x128xf32>
    %17 = arith.select %14, %15, %16 : vector<2x128xi1>, vector<2x128xf32>
    %18 = arith.truncf %17 : vector<2x128xf32> to vector<2x128xbf16>
    %cst_4 = arith.constant 5.000000e-01 : bf16
    %19 = vector.broadcast %cst_4 : bf16 to vector<1x128xbf16>
    %cst_5 = arith.constant dense<0.000000e+00> : vector<2x128xf32>
    %20 = tpu.matmul %18, %3, %cst_5 {dimension_numbers = #tpu.dot_dimension_numbers<[1], [1], [0], [0], [0, 0, 1, 0], [], []>} : vector<2x128xbf16>, vector<128x128xbf16>, vector<2x128xf32> -> vector<2x128xf32>
    %cst_6 = arith.constant dense<0.000000e+00> : vector<1x128xf32>
    %21 = tpu.matmul %19, %6, %cst_6 {dimension_numbers = #tpu.dot_dimension_numbers<[1], [1], [0], [0], [0, 0, 1, 0], [], []>} : vector<1x128xbf16>, vector<128x128xbf16>, vector<1x128xf32> -> vector<1x128xf32>
    %22 = vector.extract_strided_slice %20 {offsets = [0, 0], sizes = [1, 128], strides = [1, 1]} : vector<2x128xf32> to vector<1x128xf32>
    %23 = vector.extract_strided_slice %20 {offsets = [1, 0], sizes = [1, 128], strides = [1, 1]} : vector<2x128xf32> to vector<1x128xf32>
    %24 = arith.mulf %22, %23 : vector<1x128xf32>
    %cst_7 = arith.constant 1.000000e-16 : f32
    %25 = vector.broadcast %cst_7 : f32 to vector<1x128xf32>
    %26 = arith.maximumf %24, %25 : vector<1x128xf32>
    %27 = math.rsqrt %26 : vector<1x128xf32>
    %28 = arith.mulf %21, %27 : vector<1x128xf32>
    %c0_8 = arith.constant 0 : index
    %c0_9 = arith.constant 0 : index
    %29 = vector.load %arg2[%c0_8, %c0_9] : memref<128x128xbf16, #tpu.memory_space<vmem>>, vector<128x128xbf16>
    %c0_10 = arith.constant 0 : index
    %c0_11 = arith.constant 0 : index
    %30 = vector.load %arg4[%c0_10, %c0_11] : memref<128x256xbf16, #tpu.memory_space<vmem>>, vector<128x256xbf16>
    %cst_12 = arith.constant dense<0.000000e+00> : vector<128x256xf32>
    %31 = tpu.matmul %29, %30, %cst_12 {dimension_numbers = #tpu.dot_dimension_numbers<[1], [0], [0], [1], [0, 0, 1, 1], [], []>} : vector<128x128xbf16>, vector<128x256xbf16>, vector<128x256xf32> -> vector<128x256xf32>
    %c0_13 = arith.constant 0 : index
    %c0_14 = arith.constant 0 : index
    %32 = vector.load %arg3[%c0_13, %c0_14] : memref<128x128xbf16, #tpu.memory_space<vmem>>, vector<128x128xbf16>
    %c0_15 = arith.constant 0 : index
    %c0_16 = arith.constant 0 : index
    %33 = vector.load %arg5[%c0_15, %c0_16] : memref<128x256xbf16, #tpu.memory_space<vmem>>, vector<128x256xbf16>
    %cst_17 = arith.constant dense<0.000000e+00> : vector<128x256xf32>
    %34 = tpu.matmul %32, %33, %cst_17 {dimension_numbers = #tpu.dot_dimension_numbers<[1], [0], [0], [1], [0, 0, 1, 1], [], []>} : vector<128x128xbf16>, vector<128x256xbf16>, vector<128x256xf32> -> vector<128x256xf32>
    %35 = arith.addf %31, %34 : vector<128x256xf32>
    %c0_18 = arith.constant 0 : index
    %c0_19 = arith.constant 0 : index
    %36 = vector.load %arg6[%c0_18, %c0_19] : memref<4x256xf32, #tpu.memory_space<vmem>>, vector<1x256xf32>
    %37 = vector.broadcast %36 : vector<1x256xf32> to vector<128x256xf32>
    %38 = arith.addf %35, %37 : vector<128x256xf32>
    %cst_20 = arith.constant dense<0.000000e+00> : vector<128xf32>
    %39 = vector.multi_reduction <add>, %38, %cst_20 [1] : vector<128x256xf32> to vector<128xf32>
    %40 = vector.shape_cast %39 : vector<128xf32> to vector<128x1xf32>
    %cst_21 = arith.constant 3.906250e-03 : f32
    %41 = vector.broadcast %cst_21 : f32 to vector<128x1xf32>
    %42 = arith.mulf %40, %41 : vector<128x1xf32>
    %43 = vector.broadcast %42 : vector<128x1xf32> to vector<128x256xf32>
    %44 = arith.subf %38, %43 : vector<128x256xf32>
    %45 = arith.mulf %44, %44 : vector<128x256xf32>
    %cst_22 = arith.constant dense<0.000000e+00> : vector<128xf32>
    %46 = vector.multi_reduction <add>, %45, %cst_22 [1] : vector<128x256xf32> to vector<128xf32>
    %47 = vector.shape_cast %46 : vector<128xf32> to vector<128x1xf32>
    %cst_23 = arith.constant 0.00392156886 : f32
    %48 = vector.broadcast %cst_23 : f32 to vector<128x1xf32>
    %49 = arith.mulf %47, %48 : vector<128x1xf32>
    %50 = math.sqrt %49 : vector<128x1xf32>
    %cst_24 = arith.constant 9.99999997E-7 : f32
    %51 = vector.broadcast %cst_24 : f32 to vector<128x1xf32>
    %52 = arith.addf %50, %51 : vector<128x1xf32>
    %53 = tpu.reciprocal %52 {approx = true} : vector<128x1xf32> -> vector<128x1xf32>
    %54 = vector.broadcast %53 : vector<128x1xf32> to vector<128x256xf32>
    %55 = arith.mulf %44, %54 : vector<128x256xf32>
    %c1 = arith.constant 1 : index
    %c0_25 = arith.constant 0 : index
    %56 = vector.load %arg6[%c1, %c0_25] : memref<4x256xf32, #tpu.memory_space<vmem>>, vector<1x256xf32>
    %57 = vector.broadcast %56 : vector<1x256xf32> to vector<128x256xf32>
    %58 = arith.mulf %55, %57 : vector<128x256xf32>
    %c2 = arith.constant 2 : index
    %c0_26 = arith.constant 0 : index
    %59 = vector.load %arg6[%c2, %c0_26] : memref<4x256xf32, #tpu.memory_space<vmem>>, vector<1x256xf32>
    %60 = vector.broadcast %59 : vector<1x256xf32> to vector<128x256xf32>
    %61 = arith.addf %58, %60 : vector<128x256xf32>
    %cst_27 = arith.constant 0.000000e+00 : f32
    %62 = vector.broadcast %cst_27 : f32 to vector<128x256xf32>
    %63 = arith.maximumf %61, %62 : vector<128x256xf32>
    %64 = arith.truncf %63 : vector<128x256xf32> to vector<128x256xbf16>
    %c3 = arith.constant 3 : index
    %c0_28 = arith.constant 0 : index
    %65 = vector.load %arg6[%c3, %c0_28] : memref<4x256xf32, #tpu.memory_space<vmem>>, vector<1x256xf32>
    %66 = arith.truncf %65 : vector<1x256xf32> to vector<1x256xbf16>
    %c0_29 = arith.constant 0 : index
    %c0_30 = arith.constant 0 : index
    %67 = vector.load %arg8[%c0_29, %c0_30] : memref<1x2xf32, #tpu.memory_space<vmem>>, vector<1x1xf32>
    %cst_31 = arith.constant dense<0.000000e+00> : vector<1x128xf32>
    %68 = tpu.matmul %66, %64, %cst_31 {dimension_numbers = #tpu.dot_dimension_numbers<[1], [1], [0], [0], [0, 0, 1, 0], [], []>} : vector<1x256xbf16>, vector<128x256xbf16>, vector<1x128xf32> -> vector<1x128xf32>
    %69 = vector.broadcast %67 : vector<1x1xf32> to vector<1x128xf32>
    %70 = arith.addf %68, %69 : vector<1x128xf32>
    %71 = math.tanh %70 : vector<1x128xf32>
    %c0_32 = arith.constant 0 : index
    %c0_33 = arith.constant 0 : index
    %72 = vector.load %arg7[%c0_32, %c0_33] : memref<64x4xf32, #tpu.memory_space<vmem>>, vector<64x1xf32>
    %c0_34 = arith.constant 0 : index
    %c1_35 = arith.constant 1 : index
    %73 = vector.load %arg7[%c0_34, %c1_35] : memref<64x4xf32, #tpu.memory_space<vmem>>, vector<64x1xf32>
    %c0_36 = arith.constant 0 : index
    %c2_37 = arith.constant 2 : index
    %74 = vector.load %arg7[%c0_36, %c2_37] : memref<64x4xf32, #tpu.memory_space<vmem>>, vector<64x1xf32>
    %c0_38 = arith.constant 0 : index
    %c3_39 = arith.constant 3 : index
    %75 = vector.load %arg7[%c0_38, %c3_39] : memref<64x4xf32, #tpu.memory_space<vmem>>, vector<64x1xf32>
    %76 = vector.broadcast %72 : vector<64x1xf32> to vector<64x128xf32>
    %77 = vector.broadcast %71 : vector<1x128xf32> to vector<64x128xf32>
    %78 = arith.mulf %76, %77 : vector<64x128xf32>
    %79 = vector.broadcast %73 : vector<64x1xf32> to vector<64x128xf32>
    %80 = vector.broadcast %28 : vector<1x128xf32> to vector<64x128xf32>
    %81 = arith.mulf %79, %80 : vector<64x128xf32>
    %82 = arith.addf %78, %81 : vector<64x128xf32>
    %83 = vector.broadcast %74 : vector<64x1xf32> to vector<64x128xf32>
    %84 = arith.addf %82, %83 : vector<64x128xf32>
    %cst_40 = arith.constant 0.000000e+00 : f32
    %85 = vector.broadcast %cst_40 : f32 to vector<64x128xf32>
    %86 = arith.maximumf %84, %85 : vector<64x128xf32>
    %c0_41 = arith.constant 0 : index
    %c1_42 = arith.constant 1 : index
    %87 = vector.load %arg8[%c0_41, %c1_42] : memref<1x2xf32, #tpu.memory_space<vmem>>, vector<1x1xf32>
    %88 = vector.broadcast %75 : vector<64x1xf32> to vector<64x128xf32>
    %89 = arith.mulf %88, %86 : vector<64x128xf32>
    %cst_43 = arith.constant dense<0.000000e+00> : vector<128xf32>
    %90 = vector.multi_reduction <add>, %89, %cst_43 [0] : vector<64x128xf32> to vector<128xf32>
    %91 = vector.shape_cast %90 : vector<128xf32> to vector<1x128xf32>
    %92 = vector.broadcast %87 : vector<1x1xf32> to vector<1x128xf32>
    %93 = arith.addf %91, %92 : vector<1x128xf32>
    %94 = arith.negf %93 : vector<1x128xf32>
    %95 = math.exp %94 : vector<1x128xf32>
    %cst_44 = arith.constant 1.000000e+00 : f32
    %96 = vector.broadcast %cst_44 : f32 to vector<1x128xf32>
    %97 = arith.addf %96, %95 : vector<1x128xf32>
    %98 = arith.divf %96, %97 : vector<1x128xf32>
    %99 = arith.addf %98, %28 : vector<1x128xf32>
    %cst_45 = arith.constant 5.000000e-01 : f32
    %100 = vector.broadcast %cst_45 : f32 to vector<1x128xf32>
    %101 = arith.mulf %99, %100 : vector<1x128xf32>
    %c0_46 = arith.constant 0 : index
    %c0_47 = arith.constant 0 : index
    %102 = vector.load %arg9[%c0_46, %c0_47] : memref<2x128xf32, #tpu.memory_space<vmem>>, vector<1x128xf32>
    tpu.vector_store %arg9[%c0_46, %c0_47], %101 {strides = array<i32>} : memref<2x128xf32, #tpu.memory_space<vmem>>, vector<1x128xf32>,
    %c1_48 = arith.constant 1 : index
    %c0_49 = arith.constant 0 : index
    %103 = vector.load %arg9[%c1_48, %c0_49] : memref<2x128xf32, #tpu.memory_space<vmem>>, vector<1x128xf32>
    tpu.vector_store %arg9[%c1_48, %c0_49], %71 {strides = array<i32>} : memref<2x128xf32, #tpu.memory_space<vmem>>, vector<1x128xf32>,
    return
  }
  func.func @transform_0(%arg0: i32) -> (i32, i32) {
    %c0_i32 = arith.constant 0 : i32
    %c0_i32_0 = arith.constant 0 : i32
    return %arg0, %c0_i32 : i32, i32
  }
  func.func @transform_1(%arg0: i32) -> (i32, i32) {
    %c0_i32 = arith.constant 0 : i32
    %c0_i32_0 = arith.constant 0 : i32
    return %arg0, %c0_i32 : i32, i32
  }
  func.func @transform_2(%arg0: i32) -> (i32, i32) {
    %c0_i32 = arith.constant 0 : i32
    %c0_i32_0 = arith.constant 0 : i32
    return %arg0, %c0_i32 : i32, i32
  }
  func.func @transform_3(%arg0: i32) -> (i32, i32) {
    %c0_i32 = arith.constant 0 : i32
    %c0_i32_0 = arith.constant 0 : i32
    %c0_i32_1 = arith.constant 0 : i32
    return %c0_i32, %c0_i32_0 : i32, i32
  }
  func.func @transform_4(%arg0: i32) -> (i32, i32) {
    %c0_i32 = arith.constant 0 : i32
    %c0_i32_0 = arith.constant 0 : i32
    %c0_i32_1 = arith.constant 0 : i32
    return %c0_i32, %c0_i32_0 : i32, i32
  }
  func.func @transform_5(%arg0: i32) -> (i32, i32) {
    %c0_i32 = arith.constant 0 : i32
    %c0_i32_0 = arith.constant 0 : i32
    %c0_i32_1 = arith.constant 0 : i32
    return %c0_i32, %c0_i32_0 : i32, i32
  }
  func.func @transform_6(%arg0: i32) -> (i32, i32) {
    %c0_i32 = arith.constant 0 : i32
    %c0_i32_0 = arith.constant 0 : i32
    %c0_i32_1 = arith.constant 0 : i32
    return %c0_i32, %c0_i32_0 : i32, i32
  }
  func.func @transform_7(%arg0: i32) -> (i32, i32) {
    %c0_i32 = arith.constant 0 : i32
    %c0_i32_0 = arith.constant 0 : i32
    %c0_i32_1 = arith.constant 0 : i32
    return %c0_i32, %c0_i32_0 : i32, i32
  }
  func.func @transform_8(%arg0: i32) -> (i32, i32) {
    %c0_i32 = arith.constant 0 : i32
    %c0_i32_0 = arith.constant 0 : i32
    return %c0_i32, %arg0 : i32, i32
  }
}

</mosaic_0001>

<bundles_post_ra>
// kernel: tpu_custom_call.1
= control target key start
LH: loop header
LB: loop body
LE: loop exit
PB: predicated region body
PF: predicated region fallthrough
CT: control target
= control target key end

     0   :  { %s4191_s0 = inlined_call_operand.hbm [shape: bf16[384,128], index: 0, kind: input, shape index: {}]   ;;  %s4192_s1 = inlined_call_operand.hbm [shape: bf16[384,128], index: 1, kind: input, shape index: {}]   ;;  %s4193_s2 = inlined_call_operand.hbm [shape: bf16[384,128], index: 2, kind: input, shape index: {}]   ;;  %s4194_s3 = inlined_call_operand.hbm [shape: bf16[128,256], index: 3, kind: input, shape index: {}]   ;;  %s4195_s4 = inlined_call_operand.hbm [shape: bf16[128,256], index: 4, kind: input, shape index: {}]   ;;  %s4196_s5 = inlined_call_operand.vmem [shape: f32[4,256], index: 5, kind: input, shape index: {}]   ;;  %s4197_s6 = inlined_call_operand.vmem [shape: f32[64,4], index: 6, kind: input, shape index: {}]   ;;  %s4198_s7 = inlined_call_operand.vmem [shape: f32[1,2], index: 7, kind: input, shape index: {}]   ;;  %s4199_s8 = inlined_call_operand.hbm [shape: f32[2,384], index: 8, kind: output, shape index: {}]  }
   0x1   :  { %4221 = sst [smem:[#allocation22_spill]] %s4192_s1 }
   0x2   :  { %4222 = sst [smem:[#allocation23_spill]] %s4194_s3 }
   0x3   :  { %4223 = sst [smem:[#allocation24_spill]] %s4199_s8 }
   0x4   :  { %13 = vsyncpa [#allocation3], 0 }
   0x5   :  { %15 = vsyncpa [#allocation3 + $0x1], 0 }
   0x6   :  { %16 = vsyncpa [#allocation6], 0 }
   0x7   :  { %18 = vsyncpa [#allocation6 + $0x1], 0 }
   0x8   :  { %19 = vsyncpa [#allocation9], 0 }
   0x9   :  { %20 = vsyncpa [#allocation4], 0 }
   0xa   :  { %22 = vsyncpa [#allocation4 + $0x1], 0  ;;  %s2975_s27 = smov 0   ;;  %s2977_s28 = smov 0  }
   0xb   :  { %s2979_s29 = smov 0   ;;  %s2981_s30 = smov 0  }
   0xc LB: > { %4224 = sst [smem:[#allocation16_spill]] %s2896_s27  ;;  %s2996_s9 = sadd.s32 4294967295, %s2908_s30   ;;  %s2908_s30 = sphi %s2981_s30, %s4261_s30   ;;  %s2904_s29 = sphi %s2979_s29, %s4265_s29   ;;  %s2900_s28 = sphi %s2977_s28, %s4264_s28   ;;  %s2896_s27 = sphi %s2975_s27, %s4263_s27  }
   0xd   : > { %4225 = sst [smem:[#allocation17_spill]] %s2908_s30  ;;  %s2184_s10 = sadd.s32 4294967294, %s2908_s30  }
   0xe   : > { %s3000_s11 = sadd.s32 1, %s2908_s30   ;;  %s35_s12 = sadd.s32 1, %s2904_s29 }
   0xf   : > { %4226 = sst [smem:[#allocation18_spill]] %s3000_s11  ;;  %s32_s13 = ssub.s32 %s2908_s30, %s3000_s11 }
  0x10   : > { %p42_p0 = scmp.ne.s32.totalorder %s2904_s29, %s2900_s28  ;;  %p33_p1 = scmp.eq.s32.totalorder %s32_s13, 0 }
  0x11   : > { %p43_p2 = scmp.eq.s32.totalorder %s2908_s30, 0  ;;  %p48_p3 = scmp.ne.s32.totalorder %s2900_s28, %s2896_s27 }
  0x12   : > { %p4201_p4 = scmp.eq.s32.totalorder %s2996_s9, 0  ;;  %p229_p7 = scmp.eq.s32.totalorder %s2996_s9, 2 }
  0x13   : > { %s3012_s14 = scalar_select %p33_p1, %s2904_s29, %s35_s12  }
  0x14   : > { %p3014_p5 = por %p43_p2, %p42_p0  ;;  %p3020_p6 = por %p4201_p4, %p48_p3 }
  0x15   : > { %4227 = sst [smem:[#allocation19_spill]] %s3012_s14  ;;  %p235_p8 = scmp.eq.s32.totalorder %s2184_s10, 2 }
  0x16   : > { %s4228_s15 = scalar_select %p3014_p5, 1, 0 }
  0x17   : > { %s4229_s16 = scalar_select %p3020_p6, 1, 0 }
  0x18   : > { %p2185_p9 = scmp.ge.s32.totalorder %s2908_s30, 1  ;;  %p242_p10 = scmp.lt.s32.totalorder %s2908_s30, 4 }
  0x19   : > { %p3027_p11 = por %p229_p7, %p42_p0  ;;  %p3031_p12 = por %p235_p8, %p48_p3 }
  0x1a   : > { %p3035_p13 = pnand %p2185_p9, %p242_p10  ;;  %s2910_s20 = smov [#allocation8]  }
  0x1b   : > { %s4230_s17 = scalar_select %p3027_p11, 1, 0 }
  0x1c   : > { %s4231_s18 = scalar_select %p3031_p12, 1, 0 }
  0x1d   : > { %s4233_s19 = scalar_select %p3035_p13, 1, 0 }
  0x1e   : > { %4232 = sst [smem:[#allocation20_spill]] %s4231_s18  ;;  %p2411_p1 = pneg %p3035_p13 }
  0x1f   : > { %s254_s21 = sshll.u32 %s2910_s20, 4  ;;  %s4200_s23 = sand.u32 1, %s2904_s29   ;;  %s255_s21 = int_to_ptr.vmem [resolvable:$true] %s254_s21 }
  0x20   : > { %p3043_p2 = pnand %p2411_p1, %p4201_p4  ;;  %s3051_s24 = sshll.u32 %s4200_s23, 6 }
  0x21   : > { %s4235_s3 = sld [smem:[#allocation23_spill]] }
  0x22   : > { %s4234_s22 = scalar_select %p3043_p2, 1, 0 }
  0x23   : > { %p4210_p7 = pneg %p3043_p2 }
  0x27   : > { %s2688_s10 = scalar_lea.hbm %s4235_s3, 2048 }
  0x28   : > { %p2689_p3 = scmp.ne.s32.totalorder %s4235_s3, %s2688_s10  ;;  %p2695_p10 = scmp.lt.u32.totalorder %s2688_s10, %s4235_s3 }
  0x2a   : > { %p2691_p8 = pnand %p4210_p7, %p2689_p3 }
  0x2c   : > { %p2692_p9 = pneg %p2691_p8 }
  0x2e   : > { %p2697_p1 = pnand %p2695_p10, %p2692_p9 }
  0x30   : > { %2700 = shalt.err (!%p2697_p1)
}
  0x31   : > { %s2701_s23 = scalar_lea.vmem %s255_s21, 2048  ;;  %p2709_p11 = scmp.lt.s32.totalorder %s255_s21, %s255_s21 }
  0x32   : > { %p2702_p4 = scmp.ne.s32.totalorder %s255_s21, %s2701_s23  ;;  %p2710_p6 = scmp.lt.s32.totalorder %s2701_s23, %s2701_s23 }
  0x34   : > { %p2704_p0 = pnand %p2702_p4, %p4210_p7  ;;  %p2711_p13 = por %p2710_p6, %p2709_p11 }
  0x36   : > { %p2705_p12 = pneg %p2704_p0 }
  0x38   : > { %p2712_p5 = pnand %p2711_p13, %p2705_p12 }
  0x3a   : > { %2715 = shalt.err (!%p2712_p5)
}
  0x3b   : > { %s4208_s25 = smov 128   ;;  %s4209_s14 = smov 8  }
  0x3c   : > { %2414 = dma.hbm_to_vmem [thread:$0]  (!%p3043_p2), %s4235_s3, 2048, %s255_s21, [#allocation9], %s4208_s25, %s4208_s25, %s4209_s14  }
  0x3d   : > { %s3079_s23 = sshll.u32 %s2908_s30, 10  ;;  %p4236_p4 = scmp.ne.s32.totalorder %s4228_s15, 0 }
  0x3e   : > { %p4237_p5 = scmp.lt.s32.totalorder %s2908_s30, 3  ;;  %s311_s13 = sand.u32 1, %s2908_s30  }
  0x3f   : > { %s4239_s1 = sld [smem:[#allocation22_spill]]  ;;  %s315_s21 = scalar_lea.vmem [#allocation5], %s3051_s24 }
  0x40   : > { %p3085_p6 = pnand %p4237_p5, %p4236_p4  ;;  %s322_s26 = sshll.u32 %s315_s21, 4  ;;  %s3097_s26 = int_to_ptr.vmem [resolvable:$true] %s322_s26 }
  0x41   : > { %s3099_s15 = scalar_lea.sflag [#allocation6], %s311_s13 }
  0x42   : > { %s4238_s12 = scalar_select %p3085_p6, 1, 0 }
  0x43   : > { %p3105_p12 = pneg %p3085_p6 }
  0x45   : > { %s3094_s18 = scalar_lea.hbm %s4239_s1, %s3079_s23  ;;  %s2721_s14 = scalar_lea.hbm %s4239_s1, 3072 }
  0x46   : > { %s2716_s10 = scalar_lea.hbm %s3094_s18, 1024  ;;  %p2722_p3 = scmp.lt.u32.totalorder %s3094_s18, %s4239_s1 }
  0x47   : > { %p2717_p11 = scmp.ne.s32.totalorder %s3094_s18, %s2716_s10  ;;  %p2723_p8 = scmp.lt.u32.totalorder %s2721_s14, %s2716_s10 }
  0x48   : > { %s4240_s25 = scalar_select %p3105_p12, 1, 0 }
  0x49   : > { %p2719_p13 = pnand %p3105_p12, %p2717_p11  ;;  %p2724_p9 = por %p2723_p8, %p2722_p3 }
  0x4a   : > { %p2725_p10 = scmp.lt.u32.totalorder %s2716_s10, %s3094_s18 }
  0x4b   : > { %p2720_p0 = pneg %p2719_p13 }
  0x4c   : > { %p2726_p1 = por %p2725_p10, %p2724_p9 }
  0x4e   : > { %p2727_p4 = pnand %p2726_p1, %p2720_p0 }
  0x50   : > { %2730 = shalt.err (!%p2727_p4)
}
  0x51   : > { %s2731_s13 = scalar_lea.vmem %s3097_s26, 1024  ;;  %s2913_s11 = smov [#allocation5]  }
  0x52   : > { %p2732_p5 = scmp.ne.s32.totalorder %s3097_s26, %s2731_s13  ;;  %s2736_s20 = sshll.u32 %s2913_s11, 4  ;;  %s2737_s20 = int_to_ptr.vmem [resolvable:$false] %s2736_s20 }
  0x53   : > { %s2738_s3 = scalar_lea.vmem %s2737_s20, 2048  ;;  %p2739_p7 = scmp.lt.s32.totalorder %s3097_s26, %s2737_s20 }
  0x54   : > { %p2734_p11 = pnand %p2732_p5, %p3105_p12  ;;  %p2740_p2 = scmp.lt.s32.totalorder %s2738_s3, %s2731_s13 }
  0x56   : > { %p2735_p13 = pneg %p2734_p11  ;;  %p2741_p3 = por %p2740_p2, %p2739_p7 }
  0x58   : > { %p2742_p8 = pnand %p2741_p3, %p2735_p13 }
  0x5a   : > { %2745 = shalt.err (!%p2742_p8)
}
  0x5b   : > { %s2914_s14 = smov 64   ;;  %s2915_s10 = smov 4  }
  0x5c   : > { %2424 = dma.hbm_to_vmem [thread:$0]  (!%p3085_p6), %s3094_s18, 1024, %s3097_s26, %s3099_s15, %s2914_s14, %s2914_s14, %s2915_s10  }
  0x5d   : > { %s2916_s21 = smov [#allocation10]   ;;  %s2746_s3 = scalar_lea.hbm %s4195_s4, 2048 }
  0x5e   : > { %s267_s11 = sshll.u32 %s2916_s21, 4  ;;  %p2747_p2 = scmp.ne.s32.totalorder %s4195_s4, %s2746_s3  ;;  %s268_s11 = int_to_ptr.vmem [resolvable:$true] %s267_s11 }
  0x5f   : > { %p4241_p7 = scmp.ne.s32.totalorder %s4234_s22, 0  ;;  %p2753_p1 = scmp.lt.u32.totalorder %s2746_s3, %s4195_s4 }
  0x61   : > { %p4242_p0 = pneg %p4241_p7 }
  0x63   : > { %p2749_p9 = pnand %p2747_p2, %p4242_p0 }
  0x65   : > { %p2750_p10 = pneg %p2749_p9 }
  0x67   : > { %p2755_p4 = pnand %p2753_p1, %p2750_p10 }
  0x69   : > { %2758 = shalt.err (!%p2755_p4)
}
  0x6a   : > { %s2759_s18 = scalar_lea.vmem %s268_s11, 2048  ;;  %p4243_p11 = pmov %p4242_p0 }
  0x6b   : > { %p2760_p5 = scmp.ne.s32.totalorder %s268_s11, %s2759_s18  ;;  %p2767_p8 = scmp.lt.s32.totalorder %s268_s11, %s268_s11 }
  0x6c   : > { %p2768_p6 = scmp.lt.s32.totalorder %s2759_s18, %s2759_s18 }
  0x6d   : > { %p2762_p13 = pnand %p2760_p5, %p4243_p11 }
  0x6e   : > { %p2769_p12 = por %p2768_p6, %p2767_p8 }
  0x6f   : > { %p2763_p3 = pneg %p2762_p13 }
  0x71   : > { %p2770_p0 = pnand %p2769_p12, %p2763_p3 }
  0x73   : > { %2773 = shalt.err (!%p2770_p0)
}
  0x74   : > { %s4244_s1 = smov 8   ;;  %s4245_s27 = smov 128  }
  0x75   : > { %2417 = dma.hbm_to_vmem [thread:$0]  (!%p4241_p7), %s4195_s4, 2048, %s268_s11, [#allocation9], %s4245_s27, %s4245_s27, %s4244_s1  }
  0x76   : > { %s3159_s20 = scalar_lea.hbm %s4191_s0, %s3079_s23  ;;  %s294_s22 = scalar_lea.vmem [#allocation2], %s3051_s24 }
  0x77   : > { %s301_s13 = sshll.u32 %s294_s22, 4  ;;  %s4246_s3 = sand.u32 1, %s2904_s29   ;;  %s3162_s13 = int_to_ptr.vmem [resolvable:$true] %s301_s13 }
  0x78   : > { %s3166_s18 = scalar_lea.sflag [#allocation3], %s4246_s3  ;;  %s2774_s8 = scalar_lea.hbm %s3159_s20, 1024 }
  0x79   : > { %p2775_p6 = scmp.ne.s32.totalorder %s3159_s20, %s2774_s8  ;;  %p4247_p12 = scmp.ne.s32.totalorder %s4240_s25, 0 }
  0x7a   : > { %s2779_s27 = scalar_lea.hbm %s4191_s0, 3072  ;;  %p2780_p9 = scmp.lt.u32.totalorder %s3159_s20, %s4191_s0 }
  0x7b   : > { %p2777_p2 = pnand %p2775_p6, %p4247_p12  ;;  %p2781_p10 = scmp.lt.u32.totalorder %s2779_s27, %s2774_s8 }
  0x7c   : > { %p2783_p4 = scmp.lt.u32.totalorder %s2774_s8, %s3159_s20 }
  0x7d   : > { %p2778_p7 = pneg %p2777_p2  ;;  %p2782_p1 = por %p2781_p10, %p2780_p9 }
  0x7f   : > { %p2784_p5 = por %p2783_p4, %p2782_p1 }
  0x81   : > { %p2785_p11 = pnand %p2784_p5, %p2778_p7 }
  0x83   : > { %2788 = shalt.err (!%p2785_p11)
}
  0x84   : > { %s2789_s21 = scalar_lea.vmem %s3162_s13, 1024  ;;  %s2917_s22 = smov [#allocation2]  }
  0x85   : > { %p2790_p13 = scmp.ne.s32.totalorder %s3162_s13, %s2789_s21  ;;  %s2794_s3 = sshll.u32 %s2917_s22, 4  ;;  %s2795_s3 = int_to_ptr.vmem [resolvable:$false] %s2794_s3 }
  0x86   : > { %s2796_s11 = scalar_lea.vmem %s2795_s3, 2048  ;;  %p2797_p0 = scmp.lt.s32.totalorder %s3162_s13, %s2795_s3 }
  0x87   : > { %p2792_p3 = pnand %p2790_p13, %p4247_p12  ;;  %p2798_p6 = scmp.lt.s32.totalorder %s2796_s11, %s2789_s21 }
  0x89   : > { %p2793_p8 = pneg %p2792_p3  ;;  %p2799_p2 = por %p2798_p6, %p2797_p0 }
  0x8b   : > { %p2800_p9 = pnand %p2799_p2, %p2793_p8 }
  0x8d   : > { %2803 = shalt.err (!%p2800_p9)
}
  0x8e   : > { %p4248_p7 = scmp.ne.s32.totalorder %s4238_s12, 0  ;;  %s3197_s27 = scalar_lea.hbm %s4193_s2, %s3079_s23 }
  0x8f   : > { %s336_s30 = scalar_lea.vmem [#allocation7], %s3051_s24  ;;  %s2804_s21 = scalar_lea.hbm %s3197_s27, 1024 }
  0x90   : > { %2421 = dma.hbm_to_vmem [thread:$0]  (!%p4248_p7), %s3159_s20, 1024, %s3162_s13, %s3166_s18, %s2914_s14, %s2914_s14, %s2915_s10  }
  0x91   : > { %s343_s26 = sshll.u32 %s336_s30, 4  ;;  %p2805_p10 = scmp.ne.s32.totalorder %s3197_s27, %s2804_s21  ;;  %s3200_s26 = int_to_ptr.vmem [resolvable:$true] %s343_s26 }
  0x92   : > { %s2809_s13 = scalar_lea.hbm %s4193_s2, 3072  ;;  %p2810_p5 = scmp.lt.u32.totalorder %s3197_s27, %s4193_s2 }
  0x93   : > { %p2807_p1 = pnand %p2805_p10, %p4247_p12  ;;  %p2811_p11 = scmp.lt.u32.totalorder %s2809_s13, %s2804_s21 }
  0x94   : > { %p2813_p3 = scmp.lt.u32.totalorder %s2804_s21, %s3197_s27 }
  0x95   : > { %p2808_p4 = pneg %p2807_p1  ;;  %p2812_p13 = por %p2811_p11, %p2810_p5 }
  0x97   : > { %p2814_p8 = por %p2813_p3, %p2812_p13 }
  0x99   : > { %p2815_p0 = pnand %p2814_p8, %p2808_p4 }
  0x9b   : > { %2818 = shalt.err (!%p2815_p0)
}
  0x9c   : > { %s2819_s24 = scalar_lea.vmem %s3200_s26, 1024  ;;  %s2918_s3 = smov [#allocation7]  }
  0x9d   : > { %p2820_p6 = scmp.ne.s32.totalorder %s3200_s26, %s2819_s24  ;;  %s2824_s11 = sshll.u32 %s2918_s3, 4  ;;  %s2825_s11 = int_to_ptr.vmem [resolvable:$false] %s2824_s11 }
  0x9e   : > { %s2826_s8 = scalar_lea.vmem %s2825_s11, 2048  ;;  %p2827_p10 = scmp.lt.s32.totalorder %s3200_s26, %s2825_s11 }
  0x9f   : > { %p2822_p2 = pnand %p2820_p6, %p4247_p12  ;;  %p2828_p1 = scmp.lt.s32.totalorder %s2826_s8, %s2819_s24 }
  0xa1   : > { %p2823_p9 = pneg %p2822_p2  ;;  %p2829_p5 = por %p2828_p1, %p2827_p10 }
  0xa3   : > { %p2830_p11 = pnand %p2829_p5, %p2823_p9 }
  0xa5   : > { %2833 = shalt.err (!%p2830_p11)
}
  0xa6   : > { %2427 = dma.hbm_to_vmem [thread:$0]  (!%p4248_p7), %s3197_s27, 1024, %s3200_s26, %s3099_s15, %s2914_s14, %s2914_s14, %s2915_s10  }
  0xa7   : > { %p4249_p12 = scmp.ne.s32.totalorder %s4233_s19, 0 }
  0xa9   : > { %355 = sbr.rel (%p4249_p12) target bundleno = 1347 (0x543), region = 52 }
  0xb0   : > { %s3230_s25 = sand.u32 1, %s2900_s28   ;;  %p4250_p4 = scmp.ne.s32.totalorder %s4229_s16, 0 }
  0xb1   : > { %s2199_s1 = sshll.u32 %s3230_s25, 6  ;;  %s358_s30 = scalar_lea.sflag [#allocation3], %s3230_s25 }
  0xb2   : > { %s3234_s21 = scalar_lea.vmem [#allocation2], %s2199_s1 }
  0xb3   : > { %2879 = dma.done.wait (%p4250_p4), %s358_s30, 1024  }
  0xb4   : > { %2881 = vsyncadd (%p4250_p4), %s358_s30, 4294966272  ;;  %s366_s12 = sand.u32 1, %s2996_s9   ;;  %s3241_s15 = scalar_lea.vmem [#allocation5], %s2199_s1 }
  0xb5   : > { %s367_s19 = scalar_lea.sflag [#allocation6], %s366_s12 }
  0xb6   : > { %2883 = dma.done.wait (%p4250_p4), %s367_s19, 2048  }
  0xb7   : > { %2885 = vsyncadd (%p4250_p4), %s367_s19, 4294965248  ;;  %s3247_s14 = scalar_lea.vmem [#allocation7], %s2199_s1  ;;  %p4251_p7 = scmp.eq.s32.totalorder %s2996_s9, 0 }
  0xb9   : > { %2887 = dma.done.wait (%p4251_p7), [#allocation9], 4096   ;;  %p4252_p13 = pmov %p4251_p7 }
  0xba   : > { %v2919_v0 = vmov 0.0   ;;  %v2267_v1 = vld [vmem:[%s3234_s21] sm:$0xff]   ;;  %v2298_v2 = vld [vmem:[%s3234_s21 + $0x8] sm:$0xff]   ;;  %v2299_v3 = vld [vmem:[%s3234_s21 + $0x10] sm:$0xff]   ;;  %s2920_s16 = smov 64   ;;  %vm2921_vm0 = vmmov 0   ;;  %v547_v53 = vlaneseq }
  0xbb   : > { %2889 = vsyncadd (%p4252_p13), [#allocation9], 4294963200  ;;  %2323 = vmatprep.subr.bf16.mxu0 %v2919_v0  ;;  %2343 = vmatprep.subr.bf16.mxu1 %v2919_v0  ;;  %v3258_v4 = vunpack.c.l.bf16 %v2267_v1  ;;  %v3260_v5 = vunpack.c.h.bf16 %v2267_v1  ;;  %v3262_v6 = vunpack.c.l.bf16 %v2298_v2  ;;  %v3264_v7 = vunpack.c.h.bf16 %v2298_v2  ;;  %v2300_v8 = vld [vmem:[%s3234_s21 + $0x18] sm:$0xff]   ;;  %v2301_v13 = vld [vmem:[%s3234_s21 + $0x20] sm:$0xff]   ;;  %s2204_s18 = sshll.u32 %s3230_s25, 1  ;;  %s2260_s24 = sshll.u32 %s2996_s9, 5 }
  0xbc   : > { %v3267_v9 = vunpack.c.l.bf16 %v2299_v3  ;;  %v3269_v10 = vunpack.c.h.bf16 %v2299_v3  ;;  %v3271_v11 = vunpack.c.l.bf16 %v2300_v8  ;;  %v3273_v12 = vunpack.c.h.bf16 %v2300_v8  ;;  %v2302_v14 = vld [vmem:[%s3234_s21 + $0x28] sm:$0xff]   ;;  %v2303_v17 = vld [vmem:[%s3234_s21 + $0x30] sm:$0xff]   ;;  %v2304_v18 = vld [vmem:[%s3234_s21 + $0x38] sm:$0xff]   ;;  %2339 = vmatprep.mubr.msk.bf16.mxu0 %vm2921_vm0, %v2919_v0  ;;  %2359 = vmatprep.mubr.msk.bf16.mxu1 %vm2921_vm0, %v2919_v0  ;;  %s4137_s23 = scalar_lea.vmem [#allocation11], %s2204_s18  ;;  %s4255_s1 = sld [smem:[#allocation24_spill]] }
  0xbd   : > { %v2486_v15 = vpack.i.bf16 %v3260_v5, %v3258_v4  ;;  %v2491_v19 = vpack.i.bf16 %v3264_v7, %v3262_v6  ;;  %v3287_v21 = vunpack.c.l.bf16 %v2301_v13  ;;  %v3289_v22 = vunpack.c.h.bf16 %v2301_v13  ;;  %v2554_v60 = vld [vmem:[#allocation8 + $0x4] ss:$8 sps:$4 sm:$0xff]   ;;  %v2552_v61 = vld [vmem:[#allocation8] ss:$8 sps:$4 sm:$0xff]   ;;  %v2560_v62 = vld [vmem:[#allocation8 + $0x14] ss:$8 sps:$4 sm:$0xff]  }
  0xbe   : > { %v2496_v16 = vpack.i.bf16 %v3269_v10, %v3267_v9  ;;  %v2501_v20 = vpack.i.bf16 %v3273_v12, %v3271_v11  ;;  %v3291_v23 = vunpack.c.l.bf16 %v2302_v14  ;;  %v3293_v24 = vunpack.c.h.bf16 %v2302_v14  ;;  %v2558_v1 = vld [vmem:[#allocation8 + $0x10] ss:$8 sps:$4 sm:$0xff]   ;;  %v2566_v2 = vld [vmem:[#allocation8 + $0x24] ss:$8 sps:$4 sm:$0xff]   ;;  %v2564_v3 = vld [vmem:[#allocation8 + $0x20] ss:$8 sps:$4 sm:$0xff]  }
  0xbf   : > { %2487 = vrot.lane.b32.xlu0 %v2486_v15, %s2920_s16  ;;  %v467_v25 = vmul.f32 %v3258_v4, %v3258_v4  ;;  %v468_v26 = vmul.f32 %v3260_v5, %v3260_v5  ;;  %v2506_v28 = vpack.i.bf16 %v3289_v22, %v3287_v21  ;;  %v3301_v29 = vunpack.c.l.bf16 %v2303_v17  ;;  %v2572_v8 = vld [vmem:[#allocation8 + $0x34] ss:$8 sps:$4 sm:$0xff]   ;;  %v2570_v13 = vld [vmem:[#allocation8 + $0x30] ss:$8 sps:$4 sm:$0xff]   ;;  %v2578_v14 = vld [vmem:[#allocation8 + $0x44] ss:$8 sps:$4 sm:$0xff]  }
  0xc0   : > { %2497 = vrot.lane.b32.xlu1 %v2496_v16, %s2920_s16  ;;  %v3303_v30 = vunpack.c.h.bf16 %v2303_v17  ;;  %v3305_v31 = vunpack.c.l.bf16 %v2304_v18  ;;  %v2511_v32 = vpack.i.bf16 %v3293_v24, %v3291_v23  ;;  %v3309_v33 = vunpack.c.h.bf16 %v2304_v18  ;;  %v2576_v15 = vld [vmem:[#allocation8 + $0x40] ss:$8 sps:$4 sm:$0xff]   ;;  %v2584_v16 = vld [vmem:[#allocation8 + $0x54] ss:$8 sps:$4 sm:$0xff]   ;;  %v2582_v18 = vld [vmem:[#allocation8 + $0x50] ss:$8 sps:$4 sm:$0xff]  }
  0xc1   : > { %v483_v27 = vpack.c.bf16 %v468_v26, %v467_v25  ;;  %v469_v34 = vmul.f32 %v3262_v6, %v3262_v6  ;;  %v470_v35 = vmul.f32 %v3264_v7, %v3264_v7  ;;  %v471_v39 = vmul.f32 %v3267_v9, %v3267_v9  ;;  %v2596_v25 = vld [vmem:[#allocation8 + $0x74] ss:$8 sps:$4 sm:$0xff]   ;;  %v2594_v26 = vld [vmem:[#allocation8 + $0x70] ss:$8 sps:$4 sm:$0xff]   ;;  %s2052_s3 = sshll.u32 %s4137_s23, 4  ;;  %s2039_s21 = scalar_lea.sflag [#allocation4], %s3230_s25  ;;  %s4149_s3 = int_to_ptr.vmem [resolvable:$true] %s2052_s3 }
  0xc2   : > { %v2516_v36 = vpack.i.bf16 %v3303_v30, %v3301_v29  ;;  %v2521_v37 = vpack.i.bf16 %v3309_v33, %v3305_v31  ;;  %v472_v40 = vmul.f32 %v3269_v10, %v3269_v10  ;;  %v473_v42 = vmul.f32 %v3271_v11, %v3271_v11  ;;  %s4147_s30 = scalar_lea.hbm %s4255_s1, %s2260_s24  ;;  %s2834_s12 = scalar_lea.vmem %s4149_s3, 32 }
  0xc3   : > { %2492 = vrot.lane.b32.xlu0 %v2491_v19, %s2920_s16  ;;  %2324 = vmatpush3.bf16.xpose.msra.mxu0 %v483_v27  ;;  %v484_v38 = vpack.c.bf16 %v470_v35, %v469_v34  ;;  %v474_v43 = vmul.f32 %v3273_v12, %v3273_v12  ;;  %v475_v45 = vmul.f32 %v3287_v21, %v3287_v21  ;;  %v548_v55 = vand.u32 127, %v547_v53  ;;  %v2590_v19 = vld [vmem:[#allocation8 + $0x64] ss:$8 sps:$4 sm:$0xff]   ;;  %p2835_p3 = scmp.ne.s32.totalorder %s4149_s3, %s2834_s12  ;;  %p4256_p8 = scmp.ne.s32.totalorder %s4230_s17, 0 }
  0xc4   : > { %2502 = vrot.lane.b32.xlu1 %v2501_v20, %s2920_s16  ;;  %2325 = vmatprep.subr.bf16.mxu0 %v2919_v0  ;;  %v485_v41 = vpack.c.bf16 %v472_v40, %v471_v39  ;;  %v476_v46 = vmul.f32 %v3289_v22, %v3289_v22  ;;  %v477_v48 = vmul.f32 %v3291_v23, %v3291_v23  ;;  %v3347_v56 = vshrl.u32 %v547_v53, 7  ;;  %v2588_v20 = vld [vmem:[#allocation8 + $0x60] ss:$8 sps:$4 sm:$0xff]   ;;  %s2929_s9 = smov [#allocation11]  }
  0xc5   : > { %v486_v44 = vpack.c.bf16 %v474_v43, %v473_v42  ;;  %v478_v49 = vmul.f32 %v3293_v24, %v3293_v24  ;;  %v479_v51 = vmul.f32 %v3301_v29, %v3301_v29  ;;  %v480_v52 = vmul.f32 %v3303_v30, %v3303_v30  ;;  %v2600_v27 = vld [vmem:[%s3241_s15] sm:$0xff]   ;;  %v2606_v43 = vld [vmem:[%s3241_s15 + $0x18] sm:$0xff]   ;;  %v2610_v53 = vld [vmem:[%s3241_s15 + $0x28] sm:$0xff]   ;;  %p2836_p0 = pnand %p2835_p3, %p4256_p8  ;;  %s2838_s19 = sshll.u32 %s2929_s9, 4  ;;  %s2839_s19 = int_to_ptr.vmem [resolvable:$false] %s2838_s19 }
  0xc6   : > { %v487_v47 = vpack.c.bf16 %v476_v46, %v475_v45  ;;  %v481_v57 = vmul.f32 %v3305_v31, %v3305_v31  ;;  %v482_v58 = vmul.f32 %v3309_v33, %v3309_v33  ;;  %vm551_vm1 = vcmp.lt.s32.totalorder %v548_v55, 64  ;;  %p2841_p2 = scmp.lt.s32.totalorder %s4149_s3, %s2839_s19 }
  0xc7   : > { %2507 = vrot.lane.b32.xlu0 %v2506_v28, %s2920_s16  ;;  %v488_v50 = vpack.c.bf16 %v478_v49, %v477_v48  ;;  %v489_v54 = vpack.c.bf16 %v480_v52, %v479_v51  ;;  %vm552_vm2 = vcmp.eq.s32.totalorder %v3347_v56, 0  ;;  %vm2922_vm4 = vmmov 1   ;;  %v2602_v28 = vld [vmem:[%s3241_s15 + $0x8] sm:$0xff]   ;;  %v2608_v48 = vld [vmem:[%s3241_s15 + $0x20] sm:$0xff]   ;;  %p2837_p6 = pneg %p2836_p0 }
  0xc8   : > { %2512 = vrot.lane.b32.xlu1 %v2511_v32, %s2920_s16  ;;  %v490_v59 = vpack.c.bf16 %v482_v58, %v481_v57  ;;  %vm553_vm3 = vmxor %vm551_vm1, %vm552_vm2  ;;  %v2923_v63 = vmov 1.0|1.0   ;;  %v2924_v17 = vmov 0   ;;  %v2604_v32 = vld [vmem:[%s3241_s15 + $0x10] sm:$0xff]  }
  0xc9   : > { %vm554_vm5 = vmxor %vm553_vm3, %vm2922_vm4  ;;  %2526 = vset.pattern.permute.xlu1 %v2924_v17  ;;  %2527 = vset.pattern.permute.xlu0 %v2924_v17 }
  0xca   : > { %vm2205_vm6 = vmpackc.low %vm554_vm5, %vm554_vm5 }
  0xcb   : > { %2517 = vrot.lane.b32.xlu0 %v2516_v36, %s2920_s16  ;;  %2326 = vmatpush3.bf16.xpose.msra.mxu0 %v484_v38 }
  0xcc   : > { %2522 = vrot.lane.b32.xlu1 %v2521_v37, %s2920_s16  ;;  %2327 = vmatprep.subr.bf16.mxu0 %v2919_v0 }
  0xd3   : > { %2328 = vmatpush3.bf16.xpose.msra.mxu0 %v485_v41 }
  0xd4   : > { %2329 = vmatprep.subr.bf16.mxu0 %v2919_v0 }
  0xdb   : > { %2330 = vmatpush3.bf16.xpose.msra.mxu0 %v486_v44 }
  0xdc   : > { %2331 = vmatprep.subr.bf16.mxu0 %v2919_v0 }
  0xe3   : > { %2332 = vmatpush3.bf16.xpose.msra.mxu0 %v487_v47 }
  0xe4   : > { %2333 = vmatprep.subr.bf16.mxu0 %v2919_v0 }
  0xeb   : > { %2334 = vmatpush3.bf16.xpose.msra.mxu0 %v488_v50 }
  0xec   : > { %2335 = vmatprep.subr.bf16.mxu0 %v2919_v0 }
  0xf3   : > { %2336 = vmatpush3.bf16.xpose.msra.mxu0 %v489_v54 }
  0xf4   : > { %2337 = vmatprep.subr.bf16.mxu0 %v2919_v0 }
  0xfb   : > { %2338 = vmatpush3.bf16.xpose.msra.mxu0 %v490_v59  ;;  %v2612_v59 = vld [vmem:[%s3241_s15 + $0x30] sm:$0xff]  }
  0xfc   : > { %1077 = vmatprep.subr.bf16.mxu0 %v2554_v60 }
 0x102   : > { %2340 = vmatmul.mubr.msk.bf16.vlgmr.msra.gmra.mrb[0].mxu0 %vm2205_vm6, %v2923_v63 }
 0x103   : > { %1078 = vmatpush1.bf16.msra.mxu0 %v2552_v61  ;;  %1109 = vmatprep.mubr.bf16.mxu0 %v2924_v17 }
 0x104   : > { %1079 = vmatprep.subr.bf16.mxu0 %v2560_v62 }
 0x107   : > { %1080 = vmatpush1.bf16.msra.mxu0 %v2558_v1  ;;  %v2614_v1 = vld [vmem:[%s3241_s15 + $0x38] sm:$0xff]   ;;  %s2840_s15 = scalar_lea.vmem %s2839_s19, 64 }
 0x108   : > { %1081 = vmatprep.subr.bf16.mxu0 %v2566_v2  ;;  %p2842_p9 = scmp.lt.s32.totalorder %s2840_s15, %s2834_s12 }
 0x10a   : > { %p2843_p10 = por %p2842_p9, %p2841_p2 }
 0x10b   : > { %1082 = vmatpush1.bf16.msra.mxu0 %v2564_v3 }
 0x10c   : > { %1083 = vmatprep.subr.bf16.mxu0 %v2572_v8  ;;  %p2844_p1 = pnand %p2843_p10, %p2837_p6 }
 0x10f   : > { %1084 = vmatpush1.bf16.msra.mxu0 %v2570_v13 }
 0x110   : > { %1085 = vmatprep.subr.bf16.mxu0 %v2578_v14 }
 0x113   : > { %1086 = vmatpush1.bf16.msra.mxu0 %v2576_v15 }
 0x114   : > { %1087 = vmatprep.subr.bf16.mxu0 %v2584_v16 }
 0x117   : > { %1088 = vmatpush1.bf16.msra.mxu0 %v2582_v18 }
 0x118   : > { %1089 = vmatprep.subr.bf16.mxu0 %v2590_v19 }
 0x11b   : > { %1090 = vmatpush1.bf16.msra.mxu0 %v2588_v20 }
 0x11c   : > { %1091 = vmatprep.subr.bf16.mxu0 %v2596_v25 }
 0x11f   : > { %1092 = vmatpush1.bf16.msra.mxu0 %v2594_v26  ;;  %v2557_v26 = vld [vmem:[#allocation10 + $0x4] ss:$8 sps:$4 sm:$0xff]  }
 0x122   : > { %1110 = vmatmul.mubr.bf16.vlgmr.msra.gmra.mrb[4].mxu0 %v2600_v27  ;;  %v2563_v27 = vld [vmem:[#allocation10 + $0x14] ss:$8 sps:$4 sm:$0xff]  }
 0x123   : > { %1119 = vmatprep.mubr.bf16.mxu0 %v2924_v17 }
 0x12a   : > { %1120 = vmatmul.mubr.bf16.gmra.mrb[8].mxu0 %v2602_v28  ;;  %v2561_v28 = vld [vmem:[#allocation10 + $0x10] ss:$8 sps:$4 sm:$0xff]  }
 0x12b   : > { %1129 = vmatprep.mubr.bf16.mxu0 %v2924_v17 }
 0x131   : > { %v2488_v34 = vpop.permute.xlu0 %2487 }
 0x132   : > { %v2490_v35 = vunpack.i.h.bf16 %v2488_v34  ;;  %v2489_v36 = vunpack.i.l.bf16 %v2488_v34  ;;  %1130 = vmatmul.mubr.bf16.gmra.mrb[12].mxu0 %v2604_v32  ;;  %v2498_v46 = vpop.permute.xlu1 %2497  ;;  %v2569_v32 = vld [vmem:[#allocation10 + $0x24] ss:$8 sps:$4 sm:$0xff]  }
 0x133   : > { %1139 = vmatprep.mubr.bf16.mxu0 %v2924_v17  ;;  %v2499_v47 = vunpack.i.l.bf16 %v2498_v46  ;;  %v2581_v34 = vld [vmem:[#allocation10 + $0x44] ss:$8 sps:$4 sm:$0xff]  }
 0x134   : > { %v523_v37 = vmul.f32 %v2489_v36, %v3258_v4  ;;  %v524_v38 = vmul.f32 %v2490_v35, %v3260_v5  ;;  %v2500_v5 = vunpack.i.h.bf16 %v2498_v46  ;;  %v2579_v35 = vld [vmem:[#allocation10 + $0x40] ss:$8 sps:$4 sm:$0xff]   ;;  %v2587_v36 = vld [vmem:[#allocation10 + $0x54] ss:$8 sps:$4 sm:$0xff]  }
 0x135   : > { %v2493_v39 = vpop.permute.xlu0 %2492  ;;  %v527_v50 = vmul.f32 %v2499_v47, %v3267_v9  ;;  %v2609_v46 = vld [vmem:[%s3247_s14 + $0x20] sm:$0xff]   ;;  %v2615_v47 = vld [vmem:[%s3247_s14 + $0x38] sm:$0xff]  }
 0x136   : > { %v539_v40 = vpack.c.bf16 %v524_v38, %v523_v37  ;;  %v2495_v41 = vunpack.i.h.bf16 %v2493_v39  ;;  %v2494_v42 = vunpack.i.l.bf16 %v2493_v39  ;;  %v528_v49 = vmul.f32 %v2500_v5, %v3269_v10  ;;  %v2585_v37 = vld [vmem:[#allocation10 + $0x50] ss:$8 sps:$4 sm:$0xff]   ;;  %v2593_v38 = vld [vmem:[#allocation10 + $0x64] ss:$8 sps:$4 sm:$0xff]   ;;  %v2591_v39 = vld [vmem:[#allocation10 + $0x60] ss:$8 sps:$4 sm:$0xff]  }
 0x137   : > { %v2613_v5 = vld [vmem:[%s3247_s14 + $0x30] sm:$0xff]  }
 0x138   : > { %2344 = vmatpush3.bf16.xpose.msra.mxu1 %v539_v40  ;;  %v526_v44 = vmul.f32 %v2495_v41, %v3264_v7  ;;  %v525_v45 = vmul.f32 %v2494_v42, %v3262_v6  ;;  %v2503_v7 = vpop.permute.xlu1 %2502  ;;  %v541_v6 = vpack.c.bf16 %v528_v49, %v527_v50  ;;  %v2599_v40 = vld [vmem:[#allocation10 + $0x74] ss:$8 sps:$4 sm:$0xff]   ;;  %v2597_v41 = vld [vmem:[#allocation10 + $0x70] ss:$8 sps:$4 sm:$0xff]   ;;  %v2601_v42 = vld [vmem:[%s3247_s14] sm:$0xff]  }
 0x139   : > { %2345 = vmatprep.subr.bf16.mxu1 %v2919_v0  ;;  %v2505_v51 = vunpack.i.h.bf16 %v2503_v7  ;;  %v2504_v52 = vunpack.i.l.bf16 %v2503_v7  ;;  %v2508_v10 = vpop.permute.xlu0 %2507 }
 0x13a   : > { %1140 = vmatmul.mubr.bf16.gmra.mrb[16].mxu0 %v2606_v43  ;;  %v540_v4 = vpack.c.bf16 %v526_v44, %v525_v45  ;;  %v2510_v57 = vunpack.i.h.bf16 %v2508_v10  ;;  %v2509_v58 = vunpack.i.l.bf16 %v2508_v10  ;;  %v2603_v43 = vld [vmem:[%s3247_s14 + $0x8] sm:$0xff]   ;;  %v2605_v44 = vld [vmem:[%s3247_s14 + $0x10] sm:$0xff]   ;;  %v2607_v45 = vld [vmem:[%s3247_s14 + $0x18] sm:$0xff]  }
 0x13b   : > { %1149 = vmatprep.mubr.bf16.mxu0 %v2924_v17  ;;  %v530_v54 = vmul.f32 %v2505_v51, %v3273_v12  ;;  %v529_v55 = vmul.f32 %v2504_v52, %v3271_v11 }
 0x13c   : > { %v532_v60 = vmul.f32 %v2510_v57, %v3289_v22  ;;  %v531_v61 = vmul.f32 %v2509_v58, %v3287_v21  ;;  %v2513_v12 = vpop.permute.xlu1 %2512 }
 0x13d   : > { %v542_v9 = vpack.c.bf16 %v530_v54, %v529_v55  ;;  %v2515_v62 = vunpack.i.h.bf16 %v2513_v12  ;;  %v2514_v63 = vunpack.i.l.bf16 %v2513_v12  ;;  %v2518_v22 = vpop.permute.xlu0 %2517 }
 0x13e   : > { %v543_v11 = vpack.c.bf16 %v532_v60, %v531_v61  ;;  %v2520_v8 = vunpack.i.h.bf16 %v2518_v22  ;;  %v2519_v13 = vunpack.i.l.bf16 %v2518_v22 }
 0x13f   : > { %v534_v2 = vmul.f32 %v2515_v62, %v3293_v24  ;;  %v533_v3 = vmul.f32 %v2514_v63, %v3291_v23 }
 0x140   : > { %2346 = vmatpush3.bf16.xpose.msra.mxu1 %v540_v4  ;;  %v536_v14 = vmul.f32 %v2520_v8, %v3303_v30  ;;  %v535_v15 = vmul.f32 %v2519_v13, %v3301_v29  ;;  %v2523_v16 = vpop.permute.xlu1 %2522  ;;  %v2555_v30 = vld [vmem:[#allocation10] ss:$8 sps:$4 sm:$0xff]   ;;  %v2925_v29 = vmov 1056980736  }
 0x141   : > { %2347 = vmatprep.subr.bf16.mxu1 %v2919_v0  ;;  %v544_v21 = vpack.c.bf16 %v534_v2, %v533_v3  ;;  %v2525_v19 = vunpack.i.h.bf16 %v2523_v16  ;;  %v2524_v24 = vunpack.i.l.bf16 %v2523_v16  ;;  %v2611_v4 = vld [vmem:[%s3247_s14 + $0x28] sm:$0xff]  }
 0x142   : > { %1150 = vmatmul.mubr.bf16.gmra.mrb[20].mxu0 %v2608_v48  ;;  %v545_v18 = vpack.c.bf16 %v536_v14, %v535_v15 }
 0x143   : > { %1159 = vmatprep.mubr.bf16.mxu0 %v2924_v17  ;;  %v538_v23 = vmul.f32 %v2525_v19, %v3309_v33  ;;  %v537_v20 = vmul.f32 %v2524_v24, %v3305_v31  ;;  %v2567_v33 = vld [vmem:[#allocation10 + $0x20] ss:$8 sps:$4 sm:$0xff]   ;;  %v2575_v31 = vld [vmem:[#allocation10 + $0x34] ss:$8 sps:$4 sm:$0xff]  }
 0x145   : > { %v546_v25 = vpack.c.bf16 %v538_v23, %v537_v20 }
 0x148   : > { %2348 = vmatpush3.bf16.xpose.msra.mxu1 %v541_v6 }
 0x149   : > { %2349 = vmatprep.subr.bf16.mxu1 %v2919_v0 }
 0x14a   : > { %1160 = vmatmul.mubr.bf16.gmra.mrb[24].mxu0 %v2610_v53 }
 0x14b   : > { %1169 = vmatprep.mubr.bf16.mxu0 %v2924_v17 }
 0x150   : > { %2350 = vmatpush3.bf16.xpose.msra.mxu1 %v542_v9 }
 0x151   : > { %2351 = vmatprep.subr.bf16.mxu1 %v2919_v0 }
 0x152   : > { %1170 = vmatmul.mubr.bf16.gmra.mrb[28].mxu0 %v2612_v59 }
 0x153   : > { %1179 = vmatprep.mubr.bf16.mxu0 %v2924_v17 }
 0x158   : > { %2352 = vmatpush3.bf16.xpose.msra.mxu1 %v543_v11 }
 0x159   : > { %2353 = vmatprep.subr.bf16.mxu1 %v2919_v0 }
 0x15a   : > { %1180 = vmatmul.mubr.bf16.gmra.mrb[32].mxu0 %v2614_v1 }
 0x160   : > { %2354 = vmatpush3.bf16.xpose.msra.mxu1 %v544_v21 }
 0x161   : > { %2355 = vmatprep.subr.bf16.mxu1 %v2919_v0 }
 0x168   : > { %2356 = vmatpush3.bf16.xpose.msra.mxu1 %v545_v18 }
 0x169   : > { %2357 = vmatprep.subr.bf16.mxu1 %v2919_v0  ;;  %v2573_v0 = vld [vmem:[#allocation10 + $0x30] ss:$8 sps:$4 sm:$0xff]  }
 0x170   : > { %2358 = vmatpush3.bf16.xpose.msra.mxu1 %v546_v25 }
 0x171   : > { %836 = vmatprep.subr.bf16.mxu1 %v2557_v26 }
 0x177   : > { %2360 = vmatmul.mubr.bf16.vlgmr.msra.gmra.mrb[0].mxu1 %v2925_v29 }
 0x178   : > { %837 = vmatpush1.bf16.msra.mxu1 %v2555_v30  ;;  %868 = vmatprep.mubr.bf16.mxu1 %v2924_v17 }
 0x179   : > { %838 = vmatprep.subr.bf16.mxu1 %v2563_v27 }
 0x17c   : > { %839 = vmatpush1.bf16.msra.mxu1 %v2561_v28 }
 0x17d   : > { %840 = vmatprep.subr.bf16.mxu1 %v2569_v32 }
 0x180   : > { %841 = vmatpush1.bf16.msra.mxu1 %v2567_v33 }
 0x181   : > { %842 = vmatprep.subr.bf16.mxu1 %v2575_v31 }
 0x184   : > { %843 = vmatpush1.bf16.msra.mxu1 %v2573_v0  ;;  %v1190_v0 = vld [vmem:[%s4196_s5] ss:$4 sm:$0x3] }
 0x185   : > { %844 = vmatprep.subr.bf16.mxu1 %v2581_v34  ;;  %v3470_v34 = vsub.s32 1, %v3347_v56 }
 0x188   : > { %845 = vmatpush1.bf16.msra.mxu1 %v2579_v35  ;;  %v3473_v35 = vsub.s32 0, %v3347_v56 }
 0x189   : > { %846 = vmatprep.subr.bf16.mxu1 %v2587_v36 }
 0x18a   : > { %v3476_v36 = vrot.slane %v1190_v0, %v3473_v35 }
 0x18c   : > { %847 = vmatpush1.bf16.msra.mxu1 %v2585_v37  ;;  %v3479_v37 = vrot.slane %v1190_v0, %v3470_v34 }
 0x18d   : > { %848 = vmatprep.subr.bf16.mxu1 %v2593_v38 }
 0x190   : > { %849 = vmatpush1.bf16.msra.mxu1 %v2591_v39 }
 0x191   : > { %850 = vmatprep.subr.bf16.mxu1 %v2599_v40 }
 0x194   : > { %851 = vmatpush1.bf16.msra.mxu1 %v2597_v41 }
 0x197   : > { %869 = vmatmul.mubr.bf16.vlgmr.msra.gmra.mrb[4].mxu1 %v2601_v42 }
 0x198   : > { %878 = vmatprep.mubr.bf16.mxu1 %v2924_v17 }
 0x19f   : > { %879 = vmatmul.mubr.bf16.gmra.mrb[8].mxu1 %v2603_v43 }
 0x1a0   : > { %888 = vmatprep.mubr.bf16.mxu1 %v2924_v17 }
 0x1a7   : > { %889 = vmatmul.mubr.bf16.gmra.mrb[12].mxu1 %v2605_v44 }
 0x1a8   : > { %898 = vmatprep.mubr.bf16.mxu1 %v2924_v17 }
 0x1af   : > { %899 = vmatmul.mubr.bf16.gmra.mrb[16].mxu1 %v2607_v45 }
 0x1b0   : > { %908 = vmatprep.mubr.bf16.mxu1 %v2924_v17 }
 0x1b7   : > { %909 = vmatmul.mubr.bf16.gmra.mrb[20].mxu1 %v2609_v46 }
 0x1b8   : > { %918 = vmatprep.mubr.bf16.mxu1 %v2924_v17 }
 0x1bf   : > { %919 = vmatmul.mubr.bf16.gmra.mrb[24].mxu1 %v2611_v4 }
 0x1c0   : > { %928 = vmatprep.mubr.bf16.mxu1 %v2924_v17 }
 0x1c7   : > { %929 = vmatmul.mubr.bf16.gmra.mrb[28].mxu1 %v2613_v5 }
 0x1c8   : > { %938 = vmatprep.mubr.bf16.mxu1 %v2924_v17 }
 0x1cf   : > { %939 = vmatmul.mubr.bf16.gmra.mrb[32].mxu1 %v2615_v47 }
 0x1d5   : > { %v591_v48 = vpop.f32.mrb[0].mxu0 }
 0x1d6   : > { %v2341_v49 = vpop.f32.mrb[1].mxu0  ;;  %v638_v25 = vrot.slane %v591_v48, 1 }
 0x1d7   : > { %v594_v50 = vpop.f32.mrb[2].mxu0 }
 0x1d8   : > { %v2342_v7 = vpop.f32.mrb[3].mxu0  ;;  %v640_v26 = vmul.f32 %v638_v25, %v591_v48 }
 0x1da   : > { %v641_v30 = vmax.f32 %v640_v26, 1e-16 }
 0x1dc   : > { %2616 = vrsqrt.f32 %v641_v30 }
 0x1e6   : > { %v2617_v27 = vpop.eup %2616 }
 0x1f5   : > { %v1111_v6 = vpop.f32.mrb[4].mxu0 }
 0x1f6   : > { %v1113_v51 = vpop.f32.mrb[5].mxu0 }
 0x1f7   : > { %v1115_v52 = vpop.f32.mrb[6].mxu0 }
 0x1f8   : > { %v1117_v53 = vpop.f32.mrb[7].mxu0 }
 0x1fd   : > { %v1121_v54 = vpop.f32.mrb[8].mxu0 }
 0x1fe   : > { %v1123_v55 = vpop.f32.mrb[9].mxu0 }
 0x1ff   : > { %v3412_v10 = vpop.f32.mrb[10].mxu0 }
 0x200   : > { %v3414_v9 = vpop.f32.mrb[11].mxu0 }
 0x205   : > { %v3416_v57 = vpop.f32.mrb[12].mxu0 }
 0x206   : > { %v3418_v58 = vpop.f32.mrb[13].mxu0 }
 0x207   : > { %v3420_v59 = vpop.f32.mrb[14].mxu0 }
 0x208   : > { %v3422_v60 = vpop.f32.mrb[15].mxu0 }
 0x20d   : > { %v3424_v61 = vpop.f32.mrb[16].mxu0 }
 0x20e   : > { %v3426_v12 = vpop.f32.mrb[17].mxu0 }
 0x20f   : > { %v3428_v11 = vpop.f32.mrb[18].mxu0 }
 0x210   : > { %v3430_v62 = vpop.f32.mrb[19].mxu0 }
 0x215   : > { %v3432_v63 = vpop.f32.mrb[20].mxu0 }
 0x216   : > { %v3434_v1 = vpop.f32.mrb[21].mxu0 }
 0x217   : > { %v3436_v2 = vpop.f32.mrb[22].mxu0 }
 0x218   : > { %v3438_v3 = vpop.f32.mrb[23].mxu0 }
 0x21d   : > { %v3440_v22 = vpop.f32.mrb[24].mxu0 }
 0x21e   : > { %v3442_v21 = vpop.f32.mrb[25].mxu0 }
 0x21f   : > { %v3444_v8 = vpop.f32.mrb[26].mxu0 }
 0x220   : > { %v3446_v13 = vpop.f32.mrb[27].mxu0 }
 0x225   : > { %v3448_v14 = vpop.f32.mrb[28].mxu0 }
 0x226   : > { %v3450_v15 = vpop.f32.mrb[29].mxu0 }
 0x227   : > { %v3452_v16 = vpop.f32.mrb[30].mxu0 }
 0x228   : > { %v3454_v18 = vpop.f32.mrb[31].mxu0 }
 0x22d   : > { %v3456_v19 = vpop.f32.mrb[32].mxu0 }
 0x22e   : > { %v3458_v24 = vpop.f32.mrb[33].mxu0 }
 0x22f   : > { %v3460_v23 = vpop.f32.mrb[34].mxu0 }
 0x230   : > { %v3462_v20 = vpop.f32.mrb[35].mxu0 }
 0x24a   : > { %v631_v29 = vpop.f32.mrb[0].mxu1 }
 0x24b   : > { %v3464_v28 = vmul.f32 %v2617_v27, %v631_v29  ;;  %v2361_v32 = vpop.f32.mrb[1].mxu1 }
 0x24c   : > { %v634_v33 = vpop.f32.mrb[2].mxu1 }
 0x24d   : > { %4253 = vst [vmem:[#allocation21_spill] sm:$0xff] %v3464_v28  ;;  %v2362_v31 = vpop.f32.mrb[3].mxu1 }
 0x26a   : > { %v870_v38 = vpop.f32.mrb[4].mxu1 }
 0x26b   : > { %v1112_v39 = vadd.f32 %v1111_v6, %v870_v38  ;;  %v872_v40 = vpop.f32.mrb[5].mxu1 }
 0x26c   : > { %v1114_v41 = vadd.f32 %v1113_v51, %v872_v40  ;;  %v874_v42 = vpop.f32.mrb[6].mxu1 }
 0x26d   : > { %v3482_v43 = vadd.f32 %v3476_v36, %v1112_v39  ;;  %v1116_v44 = vadd.f32 %v1115_v52, %v874_v42  ;;  %v876_v45 = vpop.f32.mrb[7].mxu1 }
 0x26e   : > { %v3485_v46 = vadd.f32 %v3479_v37, %v1114_v41  ;;  %v1118_v56 = vadd.f32 %v1117_v53, %v876_v45 }
 0x26f   : > { %v3488_v4 = vadd.f32 %v3476_v36, %v1116_v44 }
 0x270   : > { %v3491_v5 = vadd.f32 %v3479_v37, %v1118_v56  ;;  %v1234_v47 = vadd.f32 %v3485_v46, %v3482_v43 }
 0x272   : > { %v880_v48 = vpop.f32.mrb[8].mxu1  ;;  %1235 = vadd.xlane.f32.xlu0 %v1234_v47  ;;  %v1237_v49 = vadd.f32 %v3491_v5, %v3488_v4 }
 0x273   : > { %v1122_v50 = vadd.f32 %v1121_v54, %v880_v48  ;;  %v882_v7 = vpop.f32.mrb[9].mxu1 }
 0x274   : > { %v1124_v6 = vadd.f32 %v1123_v55, %v882_v7  ;;  %v884_v51 = vpop.f32.mrb[10].mxu1  ;;  %1238 = vadd.xlane.f32.xlu1 %v1237_v49 }
 0x275   : > { %v3498_v52 = vadd.f32 %v3476_v36, %v1122_v50  ;;  %v1126_v53 = vadd.f32 %v3412_v10, %v884_v51  ;;  %v886_v25 = vpop.f32.mrb[11].mxu1 }
 0x276   : > { %v3502_v26 = vadd.f32 %v3479_v37, %v1124_v6  ;;  %v1128_v30 = vadd.f32 %v3414_v9, %v886_v25 }
 0x277   : > { %v3506_v27 = vadd.f32 %v3476_v36, %v1126_v53 }
 0x278   : > { %v3509_v54 = vadd.f32 %v3479_v37, %v1128_v30  ;;  %v1240_v55 = vadd.f32 %v3502_v26, %v3498_v52 }
 0x27a   : > { %v890_v29 = vpop.f32.mrb[12].mxu1  ;;  %1241 = vadd.xlane.f32.xlu0 %v1240_v55  ;;  %v1243_v9 = vadd.f32 %v3509_v54, %v3506_v27 }
 0x27b   : > { %v1132_v32 = vadd.f32 %v3416_v57, %v890_v29  ;;  %v892_v10 = vpop.f32.mrb[13].mxu1 }
 0x27c   : > { %v1134_v33 = vadd.f32 %v3418_v58, %v892_v10  ;;  %v894_v31 = vpop.f32.mrb[14].mxu1 }
 0x27d   : > { %v3518_v0 = vadd.f32 %v3476_v36, %v1132_v32  ;;  %v1136_v38 = vadd.f32 %v3420_v59, %v894_v31  ;;  %v896_v39 = vpop.f32.mrb[15].mxu1 }
 0x27e   : > { %v3522_v40 = vadd.f32 %v3479_v37, %v1134_v33  ;;  %v1138_v41 = vadd.f32 %v3422_v60, %v896_v39  ;;  %1244 = vadd.xlane.f32.xlu0 %v1243_v9 }
 0x27f   : > { %v3526_v57 = vadd.f32 %v3476_v36, %v1136_v38 }
 0x280   : > { %v3529_v58 = vadd.f32 %v3479_v37, %v1138_v41  ;;  %v1246_v42 = vadd.f32 %v3522_v40, %v3518_v0 }
 0x282   : > { %v900_v44 = vpop.f32.mrb[16].mxu1  ;;  %1247 = vadd.xlane.f32.xlu1 %v1246_v42  ;;  %v1249_v59 = vadd.f32 %v3529_v58, %v3526_v57 }
 0x283   : > { %v1142_v45 = vadd.f32 %v3424_v61, %v900_v44  ;;  %v902_v56 = vpop.f32.mrb[17].mxu1 }
 0x284   : > { %v1144_v60 = vadd.f32 %v3426_v12, %v902_v56  ;;  %v904_v47 = vpop.f32.mrb[18].mxu1  ;;  %1250 = vadd.xlane.f32.xlu0 %v1249_v59 }
 0x285   : > { %v3538_v48 = vadd.f32 %v3476_v36, %v1142_v45  ;;  %v1146_v49 = vadd.f32 %v3428_v11, %v904_v47  ;;  %v906_v50 = vpop.f32.mrb[19].mxu1 }
 0x286   : > { %v3542_v7 = vadd.f32 %v3479_v37, %v1144_v60  ;;  %v1148_v6 = vadd.f32 %v3430_v62, %v906_v50 }
 0x287   : > { %v3546_v51 = vadd.f32 %v3476_v36, %v1146_v49 }
 0x288   : > { %v3549_v61 = vadd.f32 %v3479_v37, %v1148_v6  ;;  %v1252_v12 = vadd.f32 %v3542_v7, %v3538_v48 }
 0x28a   : > { %v910_v53 = vpop.f32.mrb[20].mxu1  ;;  %1253 = vadd.xlane.f32.xlu1 %v1252_v12  ;;  %v1255_v11 = vadd.f32 %v3549_v61, %v3546_v51 }
 0x28b   : > { %v1152_v25 = vadd.f32 %v3432_v63, %v910_v53  ;;  %v912_v30 = vpop.f32.mrb[21].mxu1 }
 0x28c   : > { %v1154_v55 = vadd.f32 %v3434_v1, %v912_v30  ;;  %v914_v62 = vpop.f32.mrb[22].mxu1  ;;  %1256 = vadd.xlane.f32.xlu0 %v1255_v11 }
 0x28d   : > { %v3558_v29 = vadd.f32 %v3476_v36, %v1152_v25  ;;  %v1156_v32 = vadd.f32 %v3436_v2, %v914_v62  ;;  %v916_v10 = vpop.f32.mrb[23].mxu1 }
 0x28e   : > { %v3562_v33 = vadd.f32 %v3479_v37, %v1154_v55  ;;  %v1158_v31 = vadd.f32 %v3438_v3, %v916_v10 }
 0x28f   : > { %v3566_v9 = vadd.f32 %v3476_v36, %v1156_v32 }
 0x290   : > { %v3569_v63 = vadd.f32 %v3479_v37, %v1158_v31  ;;  %v1258_v1 = vadd.f32 %v3562_v33, %v3558_v29 }
 0x292   : > { %v920_v38 = vpop.f32.mrb[24].mxu1  ;;  %1259 = vadd.xlane.f32.xlu1 %v1258_v1  ;;  %v1261_v2 = vadd.f32 %v3569_v63, %v3566_v9 }
 0x293   : > { %v1162_v39 = vadd.f32 %v3440_v22, %v920_v38  ;;  %v922_v41 = vpop.f32.mrb[25].mxu1 }
 0x294   : > { %v1164_v42 = vadd.f32 %v3442_v21, %v922_v41  ;;  %v924_v3 = vpop.f32.mrb[26].mxu1  ;;  %1262 = vadd.xlane.f32.xlu0 %v1261_v2 }
 0x295   : > { %v3578_v44 = vadd.f32 %v3476_v36, %v1162_v39  ;;  %v1166_v59 = vadd.f32 %v3444_v8, %v924_v3  ;;  %v926_v45 = vpop.f32.mrb[27].mxu1 }
 0x296   : > { %v3582_v56 = vadd.f32 %v3479_v37, %v1164_v42  ;;  %v1168_v60 = vadd.f32 %v3446_v13, %v926_v45 }
 0x297   : > { %v3586_v47 = vadd.f32 %v3476_v36, %v1166_v59 }
 0x298   : > { %v3589_v22 = vadd.f32 %v3479_v37, %v1168_v60  ;;  %v1264_v21 = vadd.f32 %v3582_v56, %v3578_v44 }
 0x29a   : > { %v930_v49 = vpop.f32.mrb[28].mxu1  ;;  %1265 = vadd.xlane.f32.xlu1 %v1264_v21  ;;  %v1267_v8 = vadd.f32 %v3589_v22, %v3586_v47 }
 0x29b   : > { %v1172_v50 = vadd.f32 %v3448_v14, %v930_v49  ;;  %v932_v6 = vpop.f32.mrb[29].mxu1 }
 0x29c   : > { %v1174_v12 = vadd.f32 %v3450_v15, %v932_v6  ;;  %v934_v13 = vpop.f32.mrb[30].mxu1  ;;  %1268 = vadd.xlane.f32.xlu0 %v1267_v8 }
 0x29d   : > { %v3598_v53 = vadd.f32 %v3476_v36, %v1172_v50  ;;  %v1176_v11 = vadd.f32 %v3452_v16, %v934_v13  ;;  %v936_v25 = vpop.f32.mrb[31].mxu1 }
 0x29e   : > { %v3602_v30 = vadd.f32 %v3479_v37, %v1174_v12  ;;  %v1178_v55 = vadd.f32 %v3454_v18, %v936_v25 }
 0x29f   : > { %v3606_v62 = vadd.f32 %v3476_v36, %v1176_v11 }
 0x2a0   : > { %v3609_v14 = vadd.f32 %v3479_v37, %v1178_v55  ;;  %v1270_v15 = vadd.f32 %v3602_v30, %v3598_v53 }
 0x2a2   : > { %v940_v32 = vpop.f32.mrb[32].mxu1  ;;  %1271 = vadd.xlane.f32.xlu1 %v1270_v15  ;;  %v1273_v16 = vadd.f32 %v3609_v14, %v3606_v62 }
 0x2a3   : > { %v1182_v10 = vadd.f32 %v3456_v19, %v940_v32  ;;  %v942_v31 = vpop.f32.mrb[33].mxu1 }
 0x2a4   : > { %v1184_v1 = vadd.f32 %v3458_v24, %v942_v31  ;;  %v944_v18 = vpop.f32.mrb[34].mxu1  ;;  %1274 = vadd.xlane.f32.xlu0 %v1273_v16 }
 0x2a5   : > { %v3618_v38 = vadd.f32 %v3476_v36, %v1182_v10  ;;  %v1186_v2 = vadd.f32 %v3460_v23, %v944_v18  ;;  %v946_v39 = vpop.f32.mrb[35].mxu1 }
 0x2a6   : > { %v3622_v41 = vadd.f32 %v3479_v37, %v1184_v1  ;;  %v1188_v42 = vadd.f32 %v3462_v20, %v946_v39 }
 0x2a7   : > { %v3626_v3 = vadd.f32 %v3476_v36, %v1186_v2 }
 0x2a8   : > { %v3629_v19 = vadd.f32 %v3479_v37, %v1188_v42  ;;  %v1276_v24 = vadd.f32 %v3622_v41, %v3618_v38 }
 0x2aa   : > { %1277 = vadd.xlane.f32.xlu1 %v1276_v24  ;;  %v1279_v59 = vadd.f32 %v3629_v19, %v3626_v3 }
 0x2ac   : > { %1280 = vadd.xlane.f32.xlu0 %v1279_v59 }
 0x2ff   : > { %v1236_v23 = vpop.xlane.xlu0 %1235 }
 0x300   : > { %v1282_v45 = vmul.f32 0.00390625, %v1236_v23 }
 0x301   : > { %v1239_v60 = vpop.xlane.xlu1 %1238 }
 0x302   : > { %v3636_v21 = vsub.f32 %v3482_v43, %v1282_v45  ;;  %v3639_v20 = vsub.f32 %v3485_v46, %v1282_v45  ;;  %v1283_v36 = vmul.f32 0.00390625, %v1239_v60 }
 0x304   : > { %v3642_v37 = vsub.f32 %v3488_v4, %v1283_v36  ;;  %v3645_v49 = vsub.f32 %v3491_v5, %v1283_v36  ;;  %v1330_v8 = vmul.f32 %v3636_v21, %v3636_v21  ;;  %v1331_v50 = vmul.f32 %v3639_v20, %v3639_v20 }
 0x306   : > { %v1362_v6 = vadd.f32 %v1331_v50, %v1330_v8  ;;  %v1332_v43 = vmul.f32 %v3642_v37, %v3642_v37  ;;  %v1333_v46 = vmul.f32 %v3645_v49, %v3645_v49 }
 0x307   : > { %v1242_v12 = vpop.xlane.xlu0 %1241 }
 0x308   : > { %v1284_v13 = vmul.f32 0.00390625, %v1242_v12  ;;  %1363 = vadd.xlane.f32.xlu1 %v1362_v6  ;;  %v1365_v4 = vadd.f32 %v1333_v46, %v1332_v43 }
 0x30a   : > { %v3656_v5 = vsub.f32 %v3498_v52, %v1284_v13  ;;  %v3659_v11 = vsub.f32 %v3502_v26, %v1284_v13  ;;  %1366 = vadd.xlane.f32.xlu0 %v1365_v4 }
 0x30b   : > { %v1245_v25 = vpop.xlane.xlu0 %1244 }
 0x30c   : > { %v1285_v55 = vmul.f32 0.00390625, %v1245_v25  ;;  %v1334_v15 = vmul.f32 %v3656_v5, %v3656_v5  ;;  %v1335_v32 = vmul.f32 %v3659_v11, %v3659_v11 }
 0x30e   : > { %v3666_v16 = vsub.f32 %v3506_v27, %v1285_v55  ;;  %v3669_v10 = vsub.f32 %v3509_v54, %v1285_v55  ;;  %v1368_v52 = vadd.f32 %v1335_v32, %v1334_v15 }
 0x30f   : > { %v1248_v31 = vpop.xlane.xlu1 %1247 }
 0x310   : > { %v1286_v1 = vmul.f32 0.00390625, %v1248_v31  ;;  %1369 = vadd.xlane.f32.xlu1 %v1368_v52  ;;  %v1336_v26 = vmul.f32 %v3666_v16, %v3666_v16  ;;  %v1337_v18 = vmul.f32 %v3669_v10, %v3669_v10 }
 0x311   : > { %v1251_v2 = vpop.xlane.xlu0 %1250 }
 0x312   : > { %v3676_v39 = vsub.f32 %v3518_v0, %v1286_v1  ;;  %v3679_v27 = vsub.f32 %v3522_v40, %v1286_v1  ;;  %v1287_v42 = vmul.f32 0.00390625, %v1251_v2  ;;  %v1371_v54 = vadd.f32 %v1337_v18, %v1336_v26 }
 0x314   : > { %v3682_v24 = vsub.f32 %v3526_v57, %v1287_v42  ;;  %v3685_v59 = vsub.f32 %v3529_v58, %v1287_v42  ;;  %1372 = vadd.xlane.f32.xlu0 %v1371_v54  ;;  %v1338_v23 = vmul.f32 %v3676_v39, %v3676_v39  ;;  %v1339_v45 = vmul.f32 %v3679_v27, %v3679_v27 }
 0x316   : > { %v1374_v0 = vadd.f32 %v1339_v45, %v1338_v23  ;;  %v1340_v40 = vmul.f32 %v3682_v24, %v3682_v24  ;;  %v1341_v60 = vmul.f32 %v3685_v59, %v3685_v59 }
 0x317   : > { %v1254_v36 = vpop.xlane.xlu1 %1253 }
 0x318   : > { %v1288_v57 = vmul.f32 0.00390625, %v1254_v36  ;;  %1375 = vadd.xlane.f32.xlu1 %v1374_v0  ;;  %v1377_v8 = vadd.f32 %v1341_v60, %v1340_v40 }
 0x319   : > { %v1257_v58 = vpop.xlane.xlu0 %1256 }
 0x31a   : > { %v3696_v50 = vsub.f32 %v3538_v48, %v1288_v57  ;;  %v3699_v6 = vsub.f32 %v3542_v7, %v1288_v57  ;;  %v1289_v43 = vmul.f32 0.00390625, %v1257_v58  ;;  %1378 = vadd.xlane.f32.xlu0 %v1377_v8 }
 0x31c   : > { %v3702_v46 = vsub.f32 %v3546_v51, %v1289_v43  ;;  %v3705_v12 = vsub.f32 %v3549_v61, %v1289_v43  ;;  %v1342_v13 = vmul.f32 %v3696_v50, %v3696_v50  ;;  %v1343_v4 = vmul.f32 %v3699_v6, %v3699_v6 }
 0x31e   : > { %v1380_v25 = vadd.f32 %v1343_v4, %v1342_v13  ;;  %v1344_v48 = vmul.f32 %v3702_v46, %v3702_v46  ;;  %v1345_v7 = vmul.f32 %v3705_v12, %v3705_v12 }
 0x31f   : > { %v1260_v55 = vpop.xlane.xlu1 %1259 }
 0x320   : > { %v1290_v15 = vmul.f32 0.00390625, %v1260_v55  ;;  %1381 = vadd.xlane.f32.xlu1 %v1380_v25  ;;  %v1383_v51 = vadd.f32 %v1345_v7, %v1344_v48 }
 0x321   : > { %v1263_v32 = vpop.xlane.xlu0 %1262 }
 0x322   : > { %v3716_v61 = vsub.f32 %v3558_v29, %v1290_v15  ;;  %v3719_v52 = vsub.f32 %v3562_v33, %v1290_v15  ;;  %v1291_v31 = vmul.f32 0.00390625, %v1263_v32  ;;  %1384 = vadd.xlane.f32.xlu0 %v1383_v51 }
 0x324   : > { %v3722_v1 = vsub.f32 %v3566_v9, %v1291_v31  ;;  %v3725_v26 = vsub.f32 %v3569_v63, %v1291_v31  ;;  %v1346_v18 = vmul.f32 %v3716_v61, %v3716_v61  ;;  %v1347_v2 = vmul.f32 %v3719_v52, %v3719_v52 }
 0x326   : > { %v1386_v42 = vadd.f32 %v1347_v2, %v1346_v18  ;;  %v1348_v29 = vmul.f32 %v3722_v1, %v3722_v1  ;;  %v1349_v33 = vmul.f32 %v3725_v26, %v3725_v26 }
 0x327   : > { %v1266_v54 = vpop.xlane.xlu1 %1265 }
 0x328   : > { %v1292_v23 = vmul.f32 0.00390625, %v1266_v54  ;;  %1387 = vadd.xlane.f32.xlu1 %v1386_v42  ;;  %v1389_v9 = vadd.f32 %v1349_v33, %v1348_v29 }
 0x329   : > { %v1269_v45 = vpop.xlane.xlu0 %1268 }
 0x32a   : > { %v3736_v63 = vsub.f32 %v3578_v44, %v1292_v23  ;;  %v3739_v0 = vsub.f32 %v3582_v56, %v1292_v23  ;;  %v1293_v40 = vmul.f32 0.00390625, %v1269_v45  ;;  %1390 = vadd.xlane.f32.xlu0 %v1389_v9 }
 0x32c   : > { %v3742_v60 = vsub.f32 %v3586_v47, %v1293_v40  ;;  %v3745_v36 = vsub.f32 %v3589_v22, %v1293_v40  ;;  %v1350_v57 = vmul.f32 %v3736_v63, %v3736_v63  ;;  %v1351_v8 = vmul.f32 %v3739_v0, %v3739_v0 }
 0x32e   : > { %v1392_v58 = vadd.f32 %v1351_v8, %v1350_v57  ;;  %v1352_v44 = vmul.f32 %v3742_v60, %v3742_v60  ;;  %v1353_v56 = vmul.f32 %v3745_v36, %v3745_v36  ;;  %v1806_v57 = vld [vmem:[%s4197_s6] sm:$0xff]  ;;  %v2926_v8 = vmov 1  }
 0x32f   : > { %v1272_v43 = vpop.xlane.xlu1 %1271 }
 0x330   : > { %v1294_v13 = vmul.f32 0.00390625, %v1272_v43  ;;  %1393 = vadd.xlane.f32.xlu1 %v1392_v58  ;;  %v1395_v47 = vadd.f32 %v1353_v56, %v1352_v44  ;;  %v2927_v58 = vmov 3   ;;  %v3808_v44 = vld [vmem:[%s4197_s6 + $0x28] sm:$0xff]  ;;  %v1808_v56 = vld [vmem:[%s4197_s6 + $0x10] sm:$0xff]  ;;  %v3818_v43 = vld [vmem:[%s4197_s6 + $0x38] sm:$0xff] }
 0x331   : > { %v1275_v4 = vpop.xlane.xlu0 %1274 }
 0x332   : > { %v3756_v22 = vsub.f32 %v3598_v53, %v1294_v13  ;;  %v3759_v25 = vsub.f32 %v3602_v30, %v1294_v13  ;;  %v1295_v48 = vmul.f32 0.00390625, %v1275_v4  ;;  %1396 = vadd.xlane.f32.xlu0 %v1395_v47  ;;  %v3824_v13 = vld [vmem:[%s4197_s6 + $0x18] sm:$0xff]  ;;  %v2928_v47 = vmov 2   ;;  %v3833_v4 = vld [vmem:[%s4197_s6 + $0x20] sm:$0xff] }
 0x334   : > { %v3762_v7 = vsub.f32 %v3606_v62, %v1295_v48  ;;  %v3765_v55 = vsub.f32 %v3609_v14, %v1295_v48  ;;  %v1354_v15 = vmul.f32 %v3756_v22, %v3756_v22  ;;  %v1355_v51 = vmul.f32 %v3759_v25, %v3759_v25  ;;  %v3840_v48 = vld [vmem:[%s4197_s6 + $0x30] sm:$0xff] }
 0x336   : > { %v1398_v32 = vadd.f32 %v1355_v51, %v1354_v15  ;;  %v1356_v53 = vmul.f32 %v3762_v7, %v3762_v7  ;;  %v1357_v30 = vmul.f32 %v3765_v55, %v3765_v55  ;;  %v3854_v15 = vld [vmem:[%s4196_s5 + $0x3] ss:$4 sm:$0x3] }
 0x337   : > { %v1278_v31 = vpop.xlane.xlu1 %1277  ;;  %v1750_v51 = vrot.slane %v3854_v15, %v3470_v34 }
 0x338   : > { %v1296_v18 = vmul.f32 0.00390625, %v1278_v31  ;;  %1399 = vadd.xlane.f32.xlu1 %v1398_v32  ;;  %v1401_v62 = vadd.f32 %v1357_v30, %v1356_v53 }
 0x339   : > { %v1281_v2 = vpop.xlane.xlu0 %1280  ;;  %v1754_v32 = vpack.c.bf16 %v1750_v51, %v1750_v51 }
 0x33a   : > { %v3776_v14 = vsub.f32 %v3618_v38, %v1296_v18  ;;  %v3779_v42 = vsub.f32 %v3622_v41, %v1296_v18  ;;  %v1297_v29 = vmul.f32 0.00390625, %v1281_v2  ;;  %1402 = vadd.xlane.f32.xlu0 %v1401_v62 }
 0x33b   : > { %1797 = vmatprep.mubr.bf16.mxu1 %v1754_v32 }
 0x33c   : > { %v3782_v33 = vsub.f32 %v3626_v3, %v1297_v29  ;;  %v3785_v54 = vsub.f32 %v3629_v19, %v1297_v29  ;;  %v1358_v23 = vmul.f32 %v3776_v14, %v3776_v14  ;;  %v1359_v9 = vmul.f32 %v3779_v42, %v3779_v42  ;;  %v1755_v3 = vld [vmem:[%s4198_s7] sm:$0x1]  ;;  %v1807_v19 = vld [vmem:[%s4197_s6 + $0x8] sm:$0xff] }
 0x33e   : > { %v1404_v45 = vadd.f32 %v1359_v9, %v1358_v23  ;;  %v1360_v38 = vmul.f32 %v3782_v33, %v3782_v33  ;;  %v1361_v41 = vmul.f32 %v3785_v54, %v3785_v54 }
 0x340   : > { %1405 = vadd.xlane.f32.xlu1 %v1404_v45  ;;  %v1407_v40 = vadd.f32 %v1361_v41, %v1360_v38 }
 0x342   : > { %1408 = vadd.xlane.f32.xlu0 %v1407_v40 }
 0x351   : > { %1758 = vperm.xlu1 %2526, %v1755_v3  }
 0x355   : > { %1821 = vperm.xlu1 %2526, %v1807_v19  }
 0x358   : > { %1816 = vperm.xlu0 %2527, %v1806_v57  }
 0x359   : > { %2528 = vset.pattern.permute.xlu1 %v2926_v8 }
 0x35a   : > { %1867 = vperm.xlu1 %2528, %v1806_v57  }
 0x35c   : > { %2539 = vset.pattern.permute.xlu0 %v2927_v58 }
 0x35d   : > { %1971 = vperm.xlu0 %2539, %v1807_v19  }
 0x35e   : > { %1871 = vperm.xlu1 %2528, %v1807_v19  }
 0x361   : > { %2540 = vset.pattern.permute.xlu0 %v2926_v8 }
 0x362   : > { %2529 = vset.pattern.permute.xlu1 %v2924_v17  ;;  %1887 = vperm.xlu0 %2540, %v3808_v44  }
 0x363   : > { %1826 = vperm.xlu1 %2529, %v1808_v56  }
 0x366   : > { %1895 = vperm.xlu0 %2540, %v3818_v43  }
 0x367   : > { %2530 = vset.pattern.permute.xlu1 %v2926_v8 }
 0x368   : > { %1875 = vperm.xlu1 %2530, %v1808_v56  }
 0x36a   : > { %2545 = vset.pattern.permute.xlu0 %v2928_v47 }
 0x36b   : > { %1923 = vperm.xlu0 %2545, %v1807_v19  }
 0x36c   : > { %2531 = vset.pattern.permute.xlu1 %v2924_v17 }
 0x36d   : > { %1831 = vperm.xlu1 %2531, %v3824_v13  }
 0x36f   : > { %1927 = vperm.xlu0 %2545, %v1808_v56  }
 0x371   : > { %2532 = vset.pattern.permute.xlu1 %v2926_v8 }
 0x372   : > { %1879 = vperm.xlu1 %2532, %v3824_v13  }
 0x373   : > { %1935 = vperm.xlu0 %2545, %v3833_v4  }
 0x376   : > { %2533 = vset.pattern.permute.xlu1 %v2928_v47 }
 0x377   : > { %1919 = vperm.xlu1 %2533, %v1806_v57   ;;  %1943 = vperm.xlu0 %2545, %v3840_v48  }
 0x37b   : > { %2534 = vset.pattern.permute.xlu1 %v2924_v17  ;;  %2549 = vset.pattern.permute.xlu0 %v2927_v58 }
 0x37c   : > { %1836 = vperm.xlu1 %2534, %v3833_v4   ;;  %1987 = vperm.xlu0 %2549, %v3808_v44  }
 0x380   : > { %2535 = vset.pattern.permute.xlu1 %v2926_v8  ;;  %2551 = vset.pattern.permute.xlu0 %v2926_v8 }
 0x381   : > { %1883 = vperm.xlu1 %2535, %v3833_v4   ;;  %2020 = vperm.xlu0 %2551, %v1755_v3  }
 0x385   : > { %2536 = vset.pattern.permute.xlu1 %v2924_v17 }
 0x386   : > { %1841 = vperm.xlu1 %2536, %v3808_v44  }
 0x38a   : > { %2537 = vset.pattern.permute.xlu1 %v2928_v47 }
 0x38b   : > { %1931 = vperm.xlu1 %2537, %v3824_v13  }
 0x38f   : > { %2538 = vset.pattern.permute.xlu1 %v2927_v58 }
 0x390   : > { %1967 = vperm.xlu1 %2538, %v1806_v57  }
 0x394   : > { %2541 = vset.pattern.permute.xlu1 %v2924_v17 }
 0x395   : > { %v1364_v53 = vpop.xlane.xlu1 %1363  ;;  %1846 = vperm.xlu1 %2541, %v3840_v48  }
 0x396   : > { %v1410_v30 = vmul.f32 0.003921569, %v1364_v53 }
 0x397   : > { %v1367_v31 = vpop.xlane.xlu0 %1366 }
 0x398   : > { %2618 = vrsqrt.f32 %v1410_v30  ;;  %v1411_v18 = vmul.f32 0.003921569, %v1367_v31  ;;  %vm1428_vm7 = vcmp.eq.f32.partialorder %v1410_v30, inf  ;;  %v1431_v38 = vand.u32 2147483648, %v1410_v30 }
 0x399   : > { %2542 = vset.pattern.permute.xlu1 %v2926_v8  ;;  %vm1430_vm8 = vcmp.eq.f32.partialorder %v1410_v30, 0.0 }
 0x39a   : > { %1891 = vperm.xlu1 %2542, %v3840_v48   ;;  %2620 = vrsqrt.f32 %v1411_v18  ;;  %vm1435_vm9 = vcmp.eq.f32.partialorder %v1411_v18, inf  ;;  %v1438_v51 = vand.u32 2147483648, %v1411_v18  ;;  %vm1437_vm10 = vcmp.eq.f32.partialorder %v1411_v18, 0.0 }
 0x39d   : > { %v1370_v62 = vpop.xlane.xlu1 %1369 }
 0x39e   : > { %v1412_v2 = vmul.f32 0.003921569, %v1370_v62  ;;  %2543 = vset.pattern.permute.xlu1 %v2927_v58 }
 0x39f   : > { %1975 = vperm.xlu1 %2543, %v1808_v56  }
 0x3a0   : > { %2622 = vrsqrt.f32 %v1412_v2  ;;  %vm1442_vm11 = vcmp.eq.f32.partialorder %v1412_v2, inf  ;;  %vm1444_vm12 = vcmp.eq.f32.partialorder %v1412_v2, 0.0 }
 0x3a1   : > { %v1373_v29 = vpop.xlane.xlu0 %1372 }
 0x3a2   : > { %v2619_v23 = vpop.eup %2618  ;;  %v1413_v9 = vmul.f32 0.003921569, %v1373_v29 }
 0x3a3   : > { %v1427_v45 = vmul.f32 %v2619_v23, %v1410_v30  ;;  %2544 = vset.pattern.permute.xlu1 %v2924_v17  ;;  %v1445_v23 = vand.u32 2147483648, %v1412_v2 }
 0x3a4   : > { %2624 = vrsqrt.f32 %v1413_v9  ;;  %1851 = vperm.xlu1 %2544, %v3818_v43   ;;  %v2621_v41 = vpop.eup %2620  ;;  %vm1449_vm13 = vcmp.eq.f32.partialorder %v1413_v9, inf  ;;  %vm1451_vm14 = vcmp.eq.f32.partialorder %v1413_v9, 0.0 }
 0x3a5   : > { %v1429_v40 = vsel %vm1428_vm7, %v1410_v30, %v1427_v45  ;;  %v1376_v3 = vpop.xlane.xlu1 %1375  ;;  %v1434_v57 = vmul.f32 %v2621_v41, %v1411_v18 }
 0x3a6   : > { %v1432_v19 = vsel %vm1430_vm8, %v1431_v38, %v1429_v40  ;;  %v3866_v8 = vmul.f32 0.003921569, %v1376_v3 }
 0x3a7   : > { %v1538_v56 = vadd.f32 1e-06, %v1432_v19  ;;  %v1379_v32 = vpop.xlane.xlu0 %1378  ;;  %v1436_v53 = vsel %vm1435_vm9, %v1411_v18, %v1434_v57  ;;  %v2255_v57 = vld [vmem:[%s4196_s5 + $0x1] ss:$4 sm:$0x3] }
 0x3a8   : > { %2626 = vrsqrt.f32 %v3866_v8  ;;  %2546 = vset.pattern.permute.xlu1 %v2928_v47  ;;  %v1439_v17 = vsel %vm1437_vm10, %v1438_v51, %v1436_v53  ;;  %v3870_v31 = vmul.f32 0.003921569, %v1379_v32  ;;  %vm1456_vm15 = vcmp.eq.f32.partialorder %v3866_v8, inf }
 0x3a9   : > { %2628 = vrcp.f32 %v1538_v56  ;;  %1939 = vperm.xlu1 %2546, %v3808_v44   ;;  %v1539_v62 = vadd.f32 1e-06, %v1439_v17  ;;  %v1452_v56 = vand.u32 2147483648, %v1413_v9  ;;  %vm1458_vm0 = vcmp.eq.f32.partialorder %v3866_v8, 0.0 }
 0x3aa   : > { %v2623_v30 = vpop.eup %2622  ;;  %2630 = vrsqrt.f32 %v3870_v31  ;;  %vm1463_vm1 = vcmp.eq.f32.partialorder %v3870_v31, inf  ;;  %vm1465_vm2 = vcmp.eq.f32.partialorder %v3870_v31, 0.0 }
 0x3ab   : > { %v1441_v29 = vmul.f32 %v2623_v30, %v1412_v2  ;;  %2632 = vrcp.f32 %v1539_v62  ;;  %v3889_v30 = vrot.slane %v2255_v57, %v3470_v34 }
 0x3ad   : > { %v1443_v45 = vsel %vm1442_vm11, %v1412_v2, %v1441_v29  ;;  %v1382_v18 = vpop.xlane.xlu1 %1381  ;;  %2547 = vset.pattern.permute.xlu1 %v2927_v58 }
 0x3ae   : > { %v2625_v38 = vpop.eup %2624  ;;  %v1446_v41 = vsel %vm1444_vm12, %v1445_v23, %v1443_v45  ;;  %v3875_v40 = vmul.f32 0.003921569, %v1382_v18  ;;  %1979 = vperm.xlu1 %2547, %v3824_v13   ;;  %v2256_v13 = vld [vmem:[%s4196_s5 + $0x2] ss:$4 sm:$0x3] }
 0x3af   : > { %v1540_v44 = vadd.f32 1e-06, %v1446_v41  ;;  %v1448_v3 = vmul.f32 %v2625_v38, %v1413_v9  ;;  %v1385_v19 = vpop.xlane.xlu0 %1384  ;;  %v3899_v38 = vrot.slane %v2256_v13, %v3473_v35 }
 0x3b0   : > { %2634 = vrsqrt.f32 %v3875_v40  ;;  %v3882_v51 = vmul.f32 0.003921569, %v1385_v19  ;;  %vm1470_vm3 = vcmp.eq.f32.partialorder %v3875_v40, inf  ;;  %vm1472_vm4 = vcmp.eq.f32.partialorder %v3875_v40, 0.0 }
 0x3b1   : > { %v1450_v2 = vsel %vm1449_vm13, %v1413_v9, %v1448_v3  ;;  %2636 = vrcp.f32 %v1540_v44  ;;  %v3894_v9 = vrot.slane %v2255_v57, %v3473_v35  ;;  %v1459_v3 = vand.u32 2147483648, %v3866_v8 }
 0x3b2   : > { %v2627_v32 = vpop.eup %2626  ;;  %v1453_v53 = vsel %vm1451_vm14, %v1452_v56, %v1450_v2  ;;  %1983 = vperm.xlu1 %2547, %v3833_v4   ;;  %2638 = vrsqrt.f32 %v3882_v51  ;;  %v3902_v4 = vrot.slane %v2256_v13, %v3470_v34  ;;  %v1466_v2 = vand.u32 2147483648, %v3870_v31 }
 0x3b3   : > { %v2629_v17 = vpop.eup %2628  ;;  %v1541_v62 = vadd.f32 1e-06, %v1453_v53  ;;  %v1455_v29 = vmul.f32 %v2627_v32, %v3866_v8  ;;  %vm1477_vm5 = vcmp.eq.f32.partialorder %v3882_v51, inf  ;;  %vm1479_vm6 = vcmp.eq.f32.partialorder %v3882_v51, 0.0 }
 0x3b4   : > { %v1571_v23 = vmul.f32 %v2629_v17, %v3639_v20  ;;  %v1570_v45 = vmul.f32 %v2629_v17, %v3636_v21  ;;  %v2631_v18 = vpop.eup %2630  ;;  %v1473_v17 = vand.u32 2147483648, %v3875_v40 }
 0x3b5   : > { %v1388_v41 = vpop.xlane.xlu1 %1387  ;;  %2640 = vrcp.f32 %v1541_v62  ;;  %v2633_v44 = vpop.eup %2632  ;;  %v1457_v21 = vsel %vm1456_vm15, %v3866_v8, %v1455_v29 }
 0x3b6   : > { %v3908_v20 = vmul.f32 0.003921569, %v1388_v41  ;;  %2548 = vset.pattern.permute.xlu1 %v2928_v47  ;;  %v1573_v34 = vmul.f32 %v2633_v44, %v3645_v49  ;;  %v1616_v57 = vmul.f32 %v3889_v30, %v1571_v23  ;;  %v1572_v56 = vmul.f32 %v2633_v44, %v3642_v37 }
 0x3b7   : > { %v1391_v19 = vpop.xlane.xlu0 %1390  ;;  %1947 = vperm.xlu1 %2548, %v3818_v43   ;;  %v1615_v32 = vmul.f32 %v3894_v9, %v1570_v45  ;;  %v1462_v47 = vmul.f32 %v2631_v18, %v3870_v31  ;;  %v1460_v37 = vsel %vm1458_vm0, %v1459_v3, %v1457_v21 }
 0x3b8   : > { %2642 = vrsqrt.f32 %v3908_v20  ;;  %v3922_v13 = vmul.f32 0.003921569, %v1391_v19  ;;  %v1618_v49 = vmul.f32 %v3889_v30, %v1573_v34  ;;  %v1617_v62 = vmul.f32 %v3894_v9, %v1572_v56 }
 0x3b9   : > { %v1661_v45 = vadd.f32 %v3902_v4, %v1616_v57  ;;  %v1660_v18 = vadd.f32 %v3899_v38, %v1615_v32  ;;  %v1542_v3 = vadd.f32 1e-06, %v1460_v37  ;;  %v1464_v21 = vsel %vm1463_vm1, %v3870_v31, %v1462_v47 }
 0x3ba   : > { %v2635_v53 = vpop.eup %2634  ;;  %2644 = vrsqrt.f32 %v3922_v13  ;;  %v1663_v8 = vadd.f32 %v3902_v4, %v1618_v49  ;;  %v1662_v41 = vadd.f32 %v3899_v38, %v1617_v62  ;;  %v1480_v19 = vand.u32 2147483648, %v3882_v51 }
 0x3bb   : > { %v2637_v29 = vpop.eup %2636  ;;  %v1469_v23 = vmul.f32 %v2635_v53, %v3875_v40  ;;  %2550 = vset.pattern.permute.xlu1 %v2927_v58  ;;  %vm1484_vm7 = vcmp.eq.f32.partialorder %v3908_v20, inf  ;;  %vm1486_vm8 = vcmp.eq.f32.partialorder %v3908_v20, 0.0  ;;  %v1693_v53 = vmax.f32 %v1661_v45, 0.0 }
 0x3bc   : > { %1991 = vperm.xlu1 %2550, %v3840_v48   ;;  %v2639_v44 = vpop.eup %2638  ;;  %v1695_v32 = vmax.f32 %v1663_v8, 0.0  ;;  %v1575_v48 = vmul.f32 %v2637_v29, %v3659_v11  ;;  %v1694_v37 = vmax.f32 %v1662_v41, 0.0  ;;  %v1467_v62 = vsel %vm1465_vm2, %v1466_v2, %v1464_v21 }
 0x3bd   : > { %v1471_v58 = vsel %vm1470_vm3, %v3875_v40, %v1469_v23  ;;  %v1394_v34 = vpop.xlane.xlu1 %1393  ;;  %v1476_v57 = vmul.f32 %v2639_v44, %v3882_v51  ;;  %v1692_v23 = vmax.f32 %v1660_v18, 0.0  ;;  %v1574_v44 = vmul.f32 %v2637_v29, %v3656_v5 }
 0x3be   : > { %v3948_v56 = vmul.f32 0.003921569, %v1394_v34  ;;  %v1474_v11 = vsel %vm1472_vm4, %v1473_v17, %v1471_v58  ;;  %v1487_v8 = vand.u32 2147483648, %v3908_v20  ;;  %v1725_v28 = vpack.c.bf16 %v1695_v32, %v1693_v53 }
 0x3bf   : > { %v2641_v49 = vpop.eup %2640  ;;  %v1397_v47 = vpop.xlane.xlu0 %1396  ;;  %v1478_v31 = vsel %vm1477_vm5, %v3882_v51, %v1476_v57  ;;  %v1724_v2 = vpack.c.bf16 %v1694_v37, %v1692_v23  ;;  %v1620_v5 = vmul.f32 %v3889_v30, %v1575_v48  ;;  %v1543_v29 = vadd.f32 1e-06, %v1467_v62 }
 0x3c0   : > { %2646 = vrsqrt.f32 %v3948_v56  ;;  %1995 = vperm.xlu1 %2550, %v3818_v43   ;;  %v3961_v34 = vmul.f32 0.003921569, %v1397_v47  ;;  %v1577_v18 = vmul.f32 %v2641_v49, %v3669_v10  ;;  %vm1491_vm9 = vcmp.eq.f32.partialorder %v3922_v13, inf  ;;  %1765 = vmatprep.subr.bf16.mxu1 %v1725_v28 }
 0x3c1   : > { %vm1493_vm10 = vcmp.eq.f32.partialorder %v3922_v13, 0.0  ;;  %1766 = vmatpush1.bf16.xpose.msra.mxu1 %v1724_v2  ;;  %v1576_v17 = vmul.f32 %v2641_v49, %v3666_v16  ;;  %v1619_v41 = vmul.f32 %v3894_v9, %v1574_v44  ;;  %v1544_v21 = vadd.f32 1e-06, %v1474_v11 }
 0x3c2   : > { %v2643_v45 = vpop.eup %2642  ;;  %2648 = vrsqrt.f32 %v3961_v34  ;;  %v1622_v40 = vmul.f32 %v3889_v30, %v1577_v18  ;;  %v1481_v58 = vsel %vm1479_vm6, %v1480_v19, %v1478_v31  ;;  %v1665_v47 = vadd.f32 %v3902_v4, %v1620_v5 }
 0x3c3   : > { %v1483_v43 = vmul.f32 %v2643_v45, %v3908_v20  ;;  %2650 = vrcp.f32 %v1542_v3  ;;  %v1494_v51 = vand.u32 2147483648, %v3922_v13  ;;  %v1621_v53 = vmul.f32 %v3894_v9, %v1576_v17 }
 0x3c4   : > { %v2645_v10 = vpop.eup %2644  ;;  %v1667_v16 = vadd.f32 %v3902_v4, %v1622_v40  ;;  %2652 = vrcp.f32 %v1543_v29  ;;  %v1545_v37 = vadd.f32 1e-06, %v1481_v58  ;;  %v1664_v62 = vadd.f32 %v3899_v38, %v1619_v41 }
 0x3c5   : > { %v1485_v57 = vsel %vm1484_vm7, %v3908_v20, %v1483_v43  ;;  %v1400_v32 = vpop.xlane.xlu1 %1399  ;;  %v1490_v28 = vmul.f32 %v2645_v10, %v3922_v13  ;;  %v1697_v45 = vmax.f32 %v1665_v47, 0.0  ;;  %v1666_v31 = vadd.f32 %v3899_v38, %v1621_v53 }
 0x3c6   : > { %v3981_v48 = vmul.f32 0.003921569, %v1400_v32  ;;  %v1488_v49 = vsel %vm1486_vm8, %v1487_v8, %v1485_v57  ;;  %v1699_v44 = vmax.f32 %v1667_v16, 0.0  ;;  %vm1498_vm11 = vcmp.eq.f32.partialorder %v3948_v56, inf }
 0x3c7   : > { %v1403_v19 = vpop.xlane.xlu0 %1402  ;;  %v1492_v3 = vsel %vm1491_vm9, %v3922_v13, %v1490_v28  ;;  %v1546_v8 = vadd.f32 1e-06, %v1488_v49  ;;  %v1696_v29 = vmax.f32 %v1664_v62, 0.0  ;;  %v1698_v13 = vmax.f32 %v1666_v31, 0.0 }
 0x3c8   : > { %2654 = vrsqrt.f32 %v3981_v48  ;;  %v1495_v23 = vsel %vm1493_vm10, %v1494_v51, %v1492_v3  ;;  %v3996_v20 = vmul.f32 0.003921569, %v1403_v19  ;;  %v1727_v5 = vpack.c.bf16 %v1699_v44, %v1697_v45 }
 0x3c9   : > { %2656 = vrcp.f32 %v1544_v21  ;;  %v1547_v2 = vadd.f32 1e-06, %v1495_v23  ;;  %v1726_v10 = vpack.c.bf16 %v1698_v13, %v1696_v29  ;;  %v1501_v57 = vand.u32 2147483648, %v3948_v56 }
 0x3ca   : > { %v2647_v11 = vpop.eup %2646  ;;  %2658 = vrsqrt.f32 %v3996_v20  ;;  %1767 = vmatprep.subr.bf16.mxu1 %v1727_v5  ;;  %vm1505_vm12 = vcmp.eq.f32.partialorder %v3961_v34, inf  ;;  %vm1500_vm13 = vcmp.eq.f32.partialorder %v3948_v56, 0.0  ;;  %vm1507_vm14 = vcmp.eq.f32.partialorder %v3961_v34, 0.0 }
 0x3cb   : > { %v1497_v18 = vmul.f32 %v2647_v11, %v3948_v56  ;;  %2660 = vrcp.f32 %v1545_v37  ;;  %1768 = vmatpush1.bf16.xpose.msra.mxu1 %v1726_v10  ;;  %v1508_v49 = vand.u32 2147483648, %v3961_v34  ;;  %vm1512_vm15 = vcmp.eq.f32.partialorder %v3981_v48, inf }
 0x3cc   : > { %v2649_v43 = vpop.eup %2648  ;;  %2662 = vrcp.f32 %v1546_v8  ;;  %vm1514_vm0 = vcmp.eq.f32.partialorder %v3981_v48, 0.0  ;;  %vm1519_vm1 = vcmp.eq.f32.partialorder %v3996_v20, inf  ;;  %vm1521_vm2 = vcmp.eq.f32.partialorder %v3996_v20, 0.0 }
 0x3cd   : > { %v1499_v40 = vsel %vm1498_vm11, %v3948_v56, %v1497_v18  ;;  %v1406_v17 = vpop.xlane.xlu1 %1405  ;;  %v1504_v41 = vmul.f32 %v2649_v43, %v3961_v34  ;;  %v2651_v58 = vpop.eup %2650  ;;  %2664 = vrcp.f32 %v1547_v2  ;;  %v1515_v56 = vand.u32 2147483648, %v3981_v48 }
 0x3ce   : > { %v4004_v21 = vmul.f32 0.003921569, %v1406_v17  ;;  %v2653_v47 = vpop.eup %2652  ;;  %v1502_v16 = vsel %vm1500_vm13, %v1501_v57, %v1499_v40  ;;  %v1579_v19 = vmul.f32 %v2651_v58, %v3679_v27  ;;  %v1578_v3 = vmul.f32 %v2651_v58, %v3676_v39 }
 0x3cf   : > { %v1409_v32 = vpop.xlane.xlu0 %1408  ;;  %v1506_v28 = vsel %vm1505_vm12, %v3961_v34, %v1504_v41  ;;  %v1581_v37 = vmul.f32 %v2653_v47, %v3685_v59  ;;  %v1522_v34 = vand.u32 2147483648, %v3996_v20  ;;  %v4024_v27 = vadd.f32 1e-06, %v1502_v16 }
 0x3d0   : > { %2666 = vrsqrt.f32 %v4004_v21  ;;  %v4013_v51 = vmul.f32 0.003921569, %v1409_v32  ;;  %v1509_v62 = vsel %vm1507_vm14, %v1508_v49, %v1506_v28  ;;  %v1624_v44 = vmul.f32 %v3889_v30, %v1579_v19 }
 0x3d1   : > { %v1626_v11 = vmul.f32 %v3889_v30, %v1581_v37  ;;  %v1580_v59 = vmul.f32 %v2653_v47, %v3682_v24  ;;  %vm1526_vm3 = vcmp.eq.f32.partialorder %v4004_v21, inf  ;;  %v1529_v45 = vand.u32 2147483648, %v4004_v21 }
 0x3d2   : > { %v2655_v53 = vpop.eup %2654  ;;  %2668 = vrsqrt.f32 %v4013_v51  ;;  %v1623_v31 = vmul.f32 %v3894_v9, %v1578_v3  ;;  %v4035_v5 = vadd.f32 1e-06, %v1509_v62  ;;  %v1669_v24 = vadd.f32 %v3902_v4, %v1624_v44 }
 0x3d3   : > { %v2657_v23 = vpop.eup %2656  ;;  %v1511_v39 = vmul.f32 %v2655_v53, %v3981_v48  ;;  %v1671_v13 = vadd.f32 %v3902_v4, %v1626_v11  ;;  %vm1533_vm4 = vcmp.eq.f32.partialorder %v4013_v51, inf  ;;  %v1625_v43 = vmul.f32 %v3894_v9, %v1580_v59 }
 0x3d4   : > { %v2659_v8 = vpop.eup %2658  ;;  %v1583_v2 = vmul.f32 %v2657_v23, %v3699_v6  ;;  %v1668_v40 = vadd.f32 %v3899_v38, %v1623_v31  ;;  %vm1528_vm5 = vcmp.eq.f32.partialorder %v4004_v21, 0.0  ;;  %v1701_v6 = vmax.f32 %v1669_v24, 0.0 }
 0x3d5   : > { %v2661_v18 = vpop.eup %2660  ;;  %v1518_v29 = vmul.f32 %v2659_v8, %v3996_v20  ;;  %v1703_v10 = vmax.f32 %v1671_v13, 0.0  ;;  %v1582_v57 = vmul.f32 %v2657_v23, %v3696_v50  ;;  %v1513_v28 = vsel %vm1512_vm15, %v3981_v48, %v1511_v39 }
 0x3d6   : > { %v1585_v17 = vmul.f32 %v2661_v18, %v3705_v12  ;;  %v2663_v41 = vpop.eup %2662  ;;  %v1628_v58 = vmul.f32 %v3889_v30, %v1583_v2  ;;  %vm1535_vm6 = vcmp.eq.f32.partialorder %v4013_v51, 0.0  ;;  %v1670_v47 = vadd.f32 %v3899_v38, %v1625_v43 }
 0x3d7   : > { %v2665_v32 = vpop.eup %2664  ;;  %v1520_v49 = vsel %vm1519_vm1, %v3996_v20, %v1518_v29  ;;  %v1729_v19 = vpack.c.bf16 %v1703_v10, %v1701_v6  ;;  %v1700_v53 = vmax.f32 %v1668_v40, 0.0  ;;  %v1584_v23 = vmul.f32 %v2661_v18, %v3702_v46 }
 0x3d8   : > { %v1630_v12 = vmul.f32 %v3889_v30, %v1585_v17  ;;  %v1673_v50 = vadd.f32 %v3902_v4, %v1628_v58  ;;  %v1702_v3 = vmax.f32 %v1670_v47, 0.0  ;;  %v1516_v44 = vsel %vm1514_vm0, %v1515_v56, %v1513_v28 }
 0x3d9   : > { %1769 = vmatprep.subr.bf16.mxu1 %v1729_v19  ;;  %v1627_v11 = vmul.f32 %v3894_v9, %v1582_v57  ;;  %v1587_v59 = vmul.f32 %v2663_v41, %v3719_v52  ;;  %v1589_v8 = vmul.f32 %v2665_v32, %v3725_v26  ;;  %v1629_v24 = vmul.f32 %v3894_v9, %v1584_v23 }
 0x3da   : > { %v2667_v16 = vpop.eup %2666  ;;  %v1675_v62 = vadd.f32 %v3902_v4, %v1630_v12  ;;  %v1728_v31 = vpack.c.bf16 %v1702_v3, %v1700_v53  ;;  %v1705_v2 = vmax.f32 %v1673_v50, 0.0  ;;  %v1523_v13 = vsel %vm1521_vm2, %v1522_v34, %v1520_v49 }
 0x3db   : > { %v1525_v37 = vmul.f32 %v2667_v16, %v4004_v21  ;;  %v1536_v56 = vand.u32 2147483648, %v4013_v51  ;;  %v1672_v26 = vadd.f32 %v3899_v38, %v1627_v11  ;;  %v1674_v18 = vadd.f32 %v3899_v38, %v1629_v24 }
 0x3dc   : > { %v2669_v39 = vpop.eup %2668  ;;  %v1707_v29 = vmax.f32 %v1675_v62, 0.0  ;;  %1770 = vmatpush1.bf16.xpose.msra.mxu1 %v1728_v31  ;;  %v1632_v43 = vmul.f32 %v3889_v30, %v1587_v59  ;;  %v1550_v40 = vadd.f32 1e-06, %v1516_v44  ;;  %v1634_v34 = vmul.f32 %v3889_v30, %v1589_v8 }
 0x3dd   : > { %v1527_v46 = vsel %vm1526_vm3, %v4004_v21, %v1525_v37  ;;  %v1532_v48 = vmul.f32 %v2669_v39, %v4013_v51  ;;  %v1586_v17 = vmul.f32 %v2663_v41, %v3716_v61  ;;  %v1706_v10 = vmax.f32 %v1674_v18, 0.0 }
 0x3de   : > { %v1731_v52 = vpack.c.bf16 %v1707_v29, %v1705_v2  ;;  %v1530_v6 = vsel %vm1528_vm5, %v1529_v45, %v1527_v46  ;;  %v1677_v58 = vadd.f32 %v3902_v4, %v1632_v43  ;;  %v1588_v57 = vmul.f32 %v2665_v32, %v3722_v1 }
 0x3df   : > { %v1534_v20 = vsel %vm1533_vm4, %v4013_v51, %v1532_v48  ;;  %v1551_v28 = vadd.f32 1e-06, %v1523_v13  ;;  %v1679_v12 = vadd.f32 %v3902_v4, %v1634_v34  ;;  %v1704_v16 = vmax.f32 %v1672_v26, 0.0 }
 0x3e0   : > { %1771 = vmatprep.subr.bf16.mxu1 %v1731_v52  ;;  %v1537_v47 = vsel %vm1535_vm6, %v1536_v56, %v1534_v20  ;;  %v1631_v49 = vmul.f32 %v3894_v9, %v1586_v17  ;;  %v1633_v61 = vmul.f32 %v3894_v9, %v1588_v57  ;;  %2670 = vrcp.f32 %v4024_v27 }
 0x3e1   : > { %v1552_v21 = vadd.f32 1e-06, %v1530_v6  ;;  %v1709_v45 = vmax.f32 %v1677_v58, 0.0  ;;  %v1711_v41 = vmax.f32 %v1679_v12, 0.0  ;;  %2672 = vrcp.f32 %v4035_v5 }
 0x3e2   : > { %v1553_v19 = vadd.f32 1e-06, %v1537_v47  ;;  %v1730_v1 = vpack.c.bf16 %v1706_v10, %v1704_v16  ;;  %v1678_v32 = vadd.f32 %v3899_v38, %v1633_v61  ;;  %2674 = vrcp.f32 %v1550_v40 }
 0x3e3   : > { %v1733_v51 = vpack.c.bf16 %v1711_v41, %v1709_v45  ;;  %2676 = vrcp.f32 %v1551_v28  ;;  %v1676_v53 = vadd.f32 %v3899_v38, %v1631_v49 }
 0x3e4   : > { %1772 = vmatpush1.bf16.xpose.msra.mxu1 %v1730_v1  ;;  %2678 = vrcp.f32 %v1552_v21  ;;  %v1710_v50 = vmax.f32 %v1678_v32, 0.0 }
 0x3e5   : > { %1773 = vmatprep.subr.bf16.mxu1 %v1733_v51  ;;  %2680 = vrcp.f32 %v1553_v19  ;;  %v1708_v27 = vmax.f32 %v1676_v53, 0.0 }
 0x3e7   : > { %v1732_v3 = vpack.c.bf16 %v1710_v50, %v1708_v27 }
 0x3ea   : > { %v2671_v37 = vpop.eup %2670 }
 0x3eb   : > { %v2673_v62 = vpop.eup %2672  ;;  %v1591_v5 = vmul.f32 %v2671_v37, %v3739_v0  ;;  %v1590_v23 = vmul.f32 %v2671_v37, %v3736_v63 }
 0x3ec   : > { %v2675_v44 = vpop.eup %2674  ;;  %1774 = vmatpush1.bf16.xpose.msra.mxu1 %v1732_v3  ;;  %v1593_v11 = vmul.f32 %v2673_v62, %v3745_v36  ;;  %v1592_v59 = vmul.f32 %v2673_v62, %v3742_v60  ;;  %v1746_v3 = vrot.slane %v3854_v15, %v3473_v35 }
 0x3ed   : > { %v2677_v8 = vpop.eup %2676  ;;  %v1636_v39 = vmul.f32 %v3889_v30, %v1591_v5  ;;  %v1635_v31 = vmul.f32 %v3894_v9, %v1590_v23  ;;  %v1595_v2 = vmul.f32 %v2675_v44, %v3759_v25  ;;  %v1594_v48 = vmul.f32 %v2675_v44, %v3756_v22  ;;  %v1759_v5 = vpop.permute.xlu1 %1758 }
 0x3ee   : > { %v1638_v29 = vmul.f32 %v3889_v30, %v1593_v11  ;;  %v1637_v24 = vmul.f32 %v3894_v9, %v1592_v59  ;;  %v1597_v0 = vmul.f32 %v2677_v8, %v3765_v55  ;;  %v1596_v63 = vmul.f32 %v2677_v8, %v3762_v7  ;;  %v2679_v13 = vpop.eup %2678 }
 0x3ef   : > { %v1681_v36 = vadd.f32 %v3902_v4, %v1636_v39  ;;  %v1680_v60 = vadd.f32 %v3899_v38, %v1635_v31  ;;  %v1640_v46 = vmul.f32 %v3889_v30, %v1595_v2  ;;  %v2681_v56 = vpop.eup %2680  ;;  %v1639_v17 = vmul.f32 %v3894_v9, %v1594_v48 }
 0x3f0   : > { %v1683_v25 = vadd.f32 %v3902_v4, %v1638_v29  ;;  %v1682_v52 = vadd.f32 %v3899_v38, %v1637_v24  ;;  %v1642_v26 = vmul.f32 %v3889_v30, %v1597_v0  ;;  %v1641_v7 = vmul.f32 %v3894_v9, %v1596_v63 }
 0x3f1   : > { %v1685_v55 = vadd.f32 %v3902_v4, %v1640_v46  ;;  %v1713_v18 = vmax.f32 %v1681_v36, 0.0  ;;  %v1712_v34 = vmax.f32 %v1680_v60, 0.0  ;;  %v1599_v22 = vmul.f32 %v2679_v13, %v3779_v42  ;;  %v1822_v23 = vpop.permute.xlu1 %1821 }
 0x3f2   : > { %v1715_v43 = vmax.f32 %v1683_v25, 0.0  ;;  %v1714_v40 = vmax.f32 %v1682_v52, 0.0  ;;  %v1687_v20 = vadd.f32 %v3902_v4, %v1642_v26  ;;  %v1601_v6 = vmul.f32 %v2681_v56, %v3785_v54 }
 0x3f3   : > { %v1717_v58 = vmax.f32 %v1685_v55, 0.0  ;;  %v1686_v47 = vadd.f32 %v3899_v38, %v1641_v7  ;;  %v1644_v12 = vmul.f32 %v3889_v30, %v1599_v22  ;;  %v1600_v61 = vmul.f32 %v2681_v56, %v3782_v33 }
 0x3f4   : > { %v1735_v10 = vpack.c.bf16 %v1715_v43, %v1713_v18  ;;  %v1719_v57 = vmax.f32 %v1687_v20, 0.0  ;;  %v1734_v28 = vpack.c.bf16 %v1714_v40, %v1712_v34  ;;  %v1646_v16 = vmul.f32 %v3889_v30, %v1601_v6 }
 0x3f5   : > { %v1684_v21 = vadd.f32 %v3899_v38, %v1639_v17  ;;  %v1689_v42 = vadd.f32 %v3902_v4, %v1644_v12  ;;  %v1598_v45 = vmul.f32 %v2679_v13, %v3776_v14  ;;  %v1718_v41 = vmax.f32 %v1686_v47, 0.0  ;;  %v1868_v44 = vpop.permute.xlu1 %1867  ;;  %v1817_v13 = vpop.permute.xlu0 %1816  ;;  %v4254_v17 = vld [vmem:[#allocation21_spill] sm:$0xff] }
 0x3f6   : > { %1775 = vmatprep.subr.bf16.mxu1 %v1735_v10  ;;  %v1737_v49 = vpack.c.bf16 %v1719_v57, %v1717_v58  ;;  %v1691_v54 = vadd.f32 %v3902_v4, %v1646_v16  ;;  %v1645_v32 = vmul.f32 %v3894_v9, %v1600_v61  ;;  %v1753_v62 = vpack.c.bf16 %v1746_v3, %v1746_v3 }
 0x3f7   : > { %1776 = vmatpush1.bf16.xpose.msra.mxu1 %v1734_v28  ;;  %v1721_v19 = vmax.f32 %v1689_v42, 0.0  ;;  %v1716_v30 = vmax.f32 %v1684_v21, 0.0  ;;  %v1643_v53 = vmul.f32 %v3894_v9, %v1598_v45  ;;  %v1764_v56 = vrot.slane %v1759_v5, %v3473_v35 }
 0x3f8   : > { %1777 = vmatprep.subr.bf16.mxu1 %v1737_v49  ;;  %v1723_v1 = vmax.f32 %v1691_v54, 0.0  ;;  %v1690_v50 = vadd.f32 %v3899_v38, %v1645_v32  ;;  %v1901_v22 = vrot.slane %v4254_v17, %v3473_v35 }
 0x3f9   : > { %v1736_v33 = vpack.c.bf16 %v1718_v41, %v1716_v30  ;;  %v1688_v27 = vadd.f32 %v3899_v38, %v1643_v53  ;;  %v1872_v9 = vpop.permute.xlu1 %1871  ;;  %v1972_v36 = vpop.permute.xlu0 %1971 }
 0x3fa   : > { %v1739_v51 = vpack.c.bf16 %v1723_v1, %v1721_v19  ;;  %v1722_v4 = vmax.f32 %v1690_v50, 0.0  ;;  %v1902_v58 = vmul.f32 %v1901_v22, %v1868_v44  ;;  %v1903_v57 = vmul.f32 %v1901_v22, %v1872_v9 }
 0x3fb   : > { %v1720_v37 = vmax.f32 %v1688_v27, 0.0 }
 0x3fd   : > { %v1738_v14 = vpack.c.bf16 %v1722_v4, %v1720_v37  ;;  %v1827_v11 = vpop.permute.xlu1 %1826  ;;  %v1888_v46 = vpop.permute.xlu0 %1887 }
 0x3fe   : > { %v1907_v28 = vmul.f32 %v1901_v22, %v1888_v46 }
 0x3ff   : > { %1778 = vmatpush1.bf16.xpose.msra.mxu1 %v1736_v33 }
 0x400   : > { %1779 = vmatprep.subr.bf16.mxu1 %v1739_v51 }
 0x401   : > { %v1876_v59 = vpop.permute.xlu1 %1875  ;;  %v1896_v55 = vpop.permute.xlu0 %1895 }
 0x402   : > { %v1904_v42 = vmul.f32 %v1901_v22, %v1876_v59 }
 0x405   : > { %v1832_v8 = vpop.permute.xlu1 %1831  ;;  %v1924_v40 = vpop.permute.xlu0 %1923 }
 0x407   : > { %1780 = vmatpush1.bf16.xpose.msra.mxu1 %v1738_v14 }
 0x409   : > { %v1880_v39 = vpop.permute.xlu1 %1879  ;;  %v1928_v6 = vpop.permute.xlu0 %1927 }
 0x40a   : > { %v1905_v47 = vmul.f32 %v1901_v22, %v1880_v39 }
 0x40d   : > { %v1920_v31 = vpop.permute.xlu1 %1919  ;;  %v1936_v50 = vpop.permute.xlu0 %1935 }
 0x40e   : > { %1798 = vmatmul.mubr.bf16.vlgmr.msra.gmra.mrb[36].mxu1 %v1753_v62  ;;  %v1909_v62 = vmul.f32 %v1901_v22, %v1896_v55 }
 0x411   : > { %v1837_v38 = vpop.permute.xlu1 %1836 }
 0x415   : > { %v1884_v2 = vpop.permute.xlu1 %1883 }
 0x416   : > { %v1906_v54 = vmul.f32 %v1901_v22, %v1884_v2 }
 0x419   : > { %v1842_v29 = vpop.permute.xlu1 %1841 }
 0x41d   : > { %v1932_v24 = vpop.permute.xlu1 %1931 }
 0x421   : > { %v1968_v0 = vpop.permute.xlu1 %1967 }
 0x425   : > { %v1847_v63 = vpop.permute.xlu1 %1846 }
 0x429   : > { %v1892_v15 = vpop.permute.xlu1 %1891 }
 0x42a   : > { %v1908_v51 = vmul.f32 %v1901_v22, %v1892_v15 }
 0x42d   : > { %v1976_v60 = vpop.permute.xlu1 %1975 }
 0x431   : > { %v1852_v48 = vpop.permute.xlu1 %1851 }
 0x435   : > { %v1940_v18 = vpop.permute.xlu1 %1939 }
 0x439   : > { %v1980_v20 = vpop.permute.xlu1 %1979 }
 0x43d   : > { %v1984_v12 = vpop.permute.xlu1 %1983 }
 0x4e1   : > { %v1799_v25 = vpop.f32.mrb[36].mxu1 }
 0x4e2   : > { %v1800_v52 = vadd.f32 %v1799_v25, %v1764_v56  ;;  %v1801_v26 = vpop.f32.mrb[37].mxu1 }
 0x4e3   : > { %v1802_v7 = vpop.f32.mrb[38].mxu1 }
 0x4e4   : > { %2682 = vtanh.f32 %v1800_v52  ;;  %v1803_v43 = vpop.f32.mrb[39].mxu1 }
 0x4ee   : > { %v2683_v34 = vpop.eup %2682 }
 0x4ef   : > { %v1857_v10 = vrot.slane %v2683_v34, %v3473_v35  ;;  %2037 = vst [vmem:[%s4137_s23 + $0x1] sm:$0x1] %v2683_v34 }
 0x4f1   : > { %v1863_v16 = vmul.f32 %v1857_v10, %v1842_v29  ;;  %v1858_v49 = vmul.f32 %v1857_v10, %v1817_v13  ;;  %v1859_v61 = vmul.f32 %v1857_v10, %v1822_v23  ;;  %v1861_v21 = vmul.f32 %v1857_v10, %v1832_v8  ;;  %v1948_v23 = vpop.permute.xlu1 %1947  ;;  %v1944_v13 = vpop.permute.xlu0 %1943 }
 0x4f2   : > { %v1860_v45 = vmul.f32 %v1857_v10, %v1827_v11  ;;  %v1862_v41 = vmul.f32 %v1857_v10, %v1837_v38  ;;  %v1864_v30 = vmul.f32 %v1857_v10, %v1847_v63  ;;  %v1865_v27 = vmul.f32 %v1857_v10, %v1852_v48 }
 0x4f3   : > { %v1910_v19 = vadd.f32 %v1902_v58, %v1858_v49  ;;  %v1911_v1 = vadd.f32 %v1903_v57, %v1859_v61  ;;  %v1913_v32 = vadd.f32 %v1905_v47, %v1861_v21  ;;  %v1915_v4 = vadd.f32 %v1907_v28, %v1863_v16 }
 0x4f4   : > { %v1912_v53 = vadd.f32 %v1904_v42, %v1860_v45  ;;  %v1914_v33 = vadd.f32 %v1906_v54, %v1862_v41  ;;  %v1916_v59 = vadd.f32 %v1908_v51, %v1864_v30  ;;  %v1917_v39 = vadd.f32 %v1909_v62, %v1865_v27 }
 0x4f5   : > { %v1950_v37 = vadd.f32 %v1920_v31, %v1910_v19  ;;  %v1951_v14 = vadd.f32 %v1924_v40, %v1911_v1  ;;  %v1953_v3 = vadd.f32 %v1932_v24, %v1913_v32  ;;  %v1955_v38 = vadd.f32 %v1940_v18, %v1915_v4  ;;  %v1992_v56 = vpop.permute.xlu1 %1991  ;;  %v1988_v55 = vpop.permute.xlu0 %1987 }
 0x4f6   : > { %v1952_v5 = vadd.f32 %v1928_v6, %v1912_v53  ;;  %v1954_v11 = vadd.f32 %v1936_v50, %v1914_v33  ;;  %v1956_v31 = vadd.f32 %v1944_v13, %v1916_v59  ;;  %v1957_v26 = vadd.f32 %v1948_v23, %v1917_v39 }
 0x4f7   : > { %v1958_v44 = vmax.f32 %v1950_v37, 0.0  ;;  %v1959_v9 = vmax.f32 %v1951_v14, 0.0  ;;  %v1961_v63 = vmax.f32 %v1953_v3, 0.0  ;;  %v1963_v24 = vmax.f32 %v1955_v38, 0.0 }
 0x4f8   : > { %v1960_v8 = vmax.f32 %v1952_v5, 0.0  ;;  %v1962_v48 = vmax.f32 %v1954_v11, 0.0  ;;  %v1964_v43 = vmax.f32 %v1956_v31, 0.0  ;;  %v1965_v34 = vmax.f32 %v1957_v26, 0.0 }
 0x4f9   : > { %v1998_v2 = vmul.f32 %v1968_v0, %v1958_v44  ;;  %v1999_v29 = vmul.f32 %v1972_v36, %v1959_v9  ;;  %v2001_v25 = vmul.f32 %v1980_v20, %v1961_v63  ;;  %v2003_v18 = vmul.f32 %v1988_v55, %v1963_v24  ;;  %v1996_v0 = vpop.permute.xlu1 %1995  ;;  %v2021_v47 = vpop.permute.xlu0 %2020 }
 0x4fa   : > { %v2000_v46 = vmul.f32 %v1976_v60, %v1960_v8  ;;  %v2002_v7 = vmul.f32 %v1984_v12, %v1962_v48  ;;  %v2004_v36 = vmul.f32 %v1992_v56, %v1964_v43  ;;  %v2005_v10 = vmul.f32 %v1996_v0, %v1965_v34 }
 0x4fb   : > { %v2006_v15 = vadd.f32 %v1999_v29, %v1998_v2  ;;  %v2026_v12 = vrot.slane %v2021_v47, %v3473_v35 }
 0x4fd   : > { %v2007_v52 = vadd.f32 %v2006_v15, %v2000_v46 }
 0x4ff   : > { %v2008_v40 = vadd.f32 %v2007_v52, %v2001_v25 }
 0x501   : > { %v2009_v22 = vadd.f32 %v2008_v40, %v2002_v7 }
 0x503   : > { %v2010_v6 = vadd.f32 %v2009_v22, %v2003_v18 }
 0x505   : > { %v2011_v58 = vadd.f32 %v2010_v6, %v2004_v36 }
 0x507   : > { %v2012_v60 = vadd.f32 %v2011_v58, %v2005_v10 }
 0x509   : > { %v2013_v57 = vrot.slane %v2012_v60, 4 }
 0x50b   : > { %v2014_v28 = vadd.f32 %v2013_v57, %v2012_v60 }
 0x50d   : > { %v2015_v20 = vrot.slane %v2014_v28, 2 }
 0x50f   : > { %v2016_v16 = vadd.f32 %v2015_v20, %v2014_v28 }
 0x511   : > { %v2017_v49 = vrot.slane %v2016_v16, 1 }
 0x513   : > { %v2018_v61 = vadd.f32 %v2017_v49, %v2016_v16 }
 0x515   : > { %v2027_v21 = vadd.f32 %v2026_v12, %v2018_v61 }
 0x517   : > { %v2258_v42 = vmul.f32 -1.442695, %v2027_v21 }
 0x519   : > { %2684 = vpow2.f32 %v2258_v42 }
 0x523   : > { %v2685_v54 = vpop.eup %2684 }
 0x524   : > { %v2031_v45 = vadd.f32 1.0, %v2685_v54 }
 0x526   : > { %2686 = vrcp.f32 %v2031_v45 }
 0x530   : > { %v2687_v41 = vpop.eup %2686 }
 0x531   : > { %v2034_v19 = vadd.f32 %v2687_v41, %v4254_v17 }
 0x533   : > { %v2035_v1 = vmul.f32 0.5, %v2034_v19 }
 0x535   : > { %2036 = vst [vmem:[%s4137_s23] sm:$0x1] %v2035_v1 }
 0x536   : > { %2847 = shalt.err (!%p2844_p1)
}
 0x537   : > { %s2848_s25 = scalar_lea.hbm %s4147_s30, 32  ;;  %s2852_s10 = scalar_lea.hbm %s4255_s1, 96 }
 0x538   : > { %p2849_p5 = scmp.ne.s32.totalorder %s4147_s30, %s2848_s25  ;;  %p2853_p4 = scmp.lt.u32.totalorder %s4147_s30, %s4255_s1 }
 0x539   : > { %p2854_p7 = scmp.lt.u32.totalorder %s2852_s10, %s2848_s25  ;;  %p2856_p3 = scmp.lt.u32.totalorder %s2848_s25, %s4147_s30 }
 0x53a   : > { %p2850_p11 = pnand %p2849_p5, %p4256_p8 }
 0x53b   : > { %p2855_p13 = por %p2854_p7, %p2853_p4 }
 0x53c   : > { %p2851_p12 = pneg %p2850_p11 }
 0x53d   : > { %p2857_p0 = por %p2856_p3, %p2855_p13 }
 0x53f   : > { %p2858_p6 = pnand %p2857_p0, %p2851_p12 }
 0x541   : > { %2861 = shalt.err (!%p2858_p6)
}
 0x542   : > { %2409 = dma.vmem_to_hbm [thread:$0]  (%p4256_p8), %s4149_s3, 32, %s4147_s30, %s2039_s21  }
 0x543 PF: > { %s4257_s22 = sld [smem:[#allocation17_spill]]  ;;  %s4258_s20 = sld [smem:[#allocation16_spill]] }
 0x544   : > { %s4259_s13 = sld [smem:[#allocation20_spill]] }
 0x549   : > { %p2437_p2 = scmp.ge.s32.totalorder %s4257_s22, 2  ;;  %s2064_s18 = sand.u32 1, %s4258_s20  }
 0x54a   : > { %p4260_p9 = scmp.ne.s32.totalorder %s4259_s13, 0  ;;  %s2065_s23 = scalar_lea.sflag [#allocation4], %s2064_s18 }
 0x54c   : > { %p2429_p10 = pnand %p2437_p2, %p4260_p9 }
 0x54e   : > { %2891 = dma.done.wait (!%p2429_p10), %s2065_s23, 32  }
 0x54f   : > { %2893 = vsyncadd (!%p2429_p10), %s2065_s23, 4294967264  ;;  %s4261_s30 = sld [smem:[#allocation18_spill]]  ;;  %s4262_s24 = sld [smem:[#allocation19_spill]] }
 0x550   : > { %s4263_s27 = smov %s2900_s28  ;;  %s4264_s28 = smov %s2904_s29 }
 0x555   : > { %p25_p1 = scmp.ge.s32.totalorder %s4261_s30, 5   ;;  %s4265_s29 = smov %s4262_s24 }
 0x557   :  { %27 = sbr.rel (!%p25_p1) target bundleno = 12 (0xc), region = 132 }
 0x55e   :  { %2070 = vsyncpa [#allocation3], 1 }
 0x55f   :  { %2072 = vsyncpa [#allocation3 + $0x1], 1 }
 0x560   :  { %2073 = vsyncpa [#allocation6], 1 }
 0x561   :  { %2075 = vsyncpa [#allocation6 + $0x1], 1 }
 0x562   :  { %2076 = vsyncpa [#allocation9], 1 }
 0x563   :  { %2077 = vsyncpa [#allocation4], 1 }
 0x564   :  { %2079 = vsyncpa [#allocation4 + $0x1], 1 }

</bundles_post_ra>
